<compile_context>
chip_gen: v7x
topology: tpu7x:2x2x1
jax: 0.10.0
libtpu: 0.0.40
codegen_flags: <defaults>
</compile_context>

<pallas_src>
import functools

import numpy as np
import jax
import jax.numpy as jnp
from jax.experimental import pallas as pl
from jax.experimental.pallas import tpu as pltpu


# ----------------------------------------------------------------------------
# Fused Pallas kernel: conv1 + SiLU -> conv2 + SiLU -> detect head (+ decode)
# ----------------------------------------------------------------------------
def _fused_yolo_kernel(x_ref, g1_ref, w1_ref, b1_ref, g2_ref, w2_ref, b2_ref,
                       wd_ref, bd_ref, cls_ref, anch_ref, gxy_ref, o_ref, *, stride):
    f32 = jnp.float32
    c1 = w1_ref.shape[1]
    c2 = w2_ref.shape[1]
    m1 = g1_ref.shape[2]
    m2 = g2_ref.shape[2]

    # (C0, H*W): channels on sublanes, flattened row-major spatial on lanes.
    x2 = x_ref[0]

    # ---- conv1: 9 tap-gather matmuls + 9 (Cout,Cin)@(Cin,M) weight matmuls ----
    z1 = jnp.zeros((c1, m1), f32)
    for t in range(9):
        tap = jnp.dot(x2, g1_ref[t], preferred_element_type=f32)          # (C0, M1)
        z1 = z1 + jnp.dot(w1_ref[t], tap, preferred_element_type=f32)     # (C1, M1)
    z1 = z1 + b1_ref[...]
    y1 = z1 * jax.nn.sigmoid(z1)                                          # SiLU

    # ---- conv2: same scheme; pad-1 is folded into G2 (zero columns), so no
    #      padded y1 buffer / zero fill / offset-1 store is needed at all ----
    z2 = jnp.zeros((c2, m2), f32)
    for t in range(9):
        tap = jnp.dot(y1, g2_ref[t], preferred_element_type=f32)          # (C1, M2)
        z2 = z2 + jnp.dot(w2_ref[t], tap, preferred_element_type=f32)     # (C2, M2)
    z2 = z2 + b2_ref[...]
    y2 = z2 * jax.nn.sigmoid(z2)

    # ---- detect head: 1x1 conv + sigmoid + YOLOv5 decode (channels on sublanes) ----
    raw = jnp.dot(wd_ref[...], y2, preferred_element_type=f32) + bd_ref[...]
    s = jax.nn.sigmoid(raw)                                               # (CC, M2)
    s2 = s * 2.0
    g = gxy_ref[...]                                                      # (2, M2)
    gx = g[0:1, :]                                                        # grid_x - 0.5
    gy = g[1:2, :]                                                        # grid_y - 0.5
    cls = cls_ref[...]                                                    # (CC, 1)
    gadd = jnp.where(cls < 0.5, gx, jnp.where(cls < 1.5, gy, 0.0))
    xy = (s2 + gadd) * stride
    wh = (s2 * s2) * anch_ref[...]
    o_ref[0, :, :] = jnp.where(cls < 1.5, xy, jnp.where(cls < 3.5, wh, s))


def fused_forward(x2d, g1, w1k, b1, g2, w2k, b2, wdk, bd, cls, anch, gxy, *, stride):
    """x2d: (b, C0, H*W) NCHW input flattened (free view).  Returns (b, na*no, ny*nx)."""
    b, c0, hw = x2d.shape
    m1 = g1.shape[2]
    m2 = g2.shape[2]
    c1, c2, cc = w1k.shape[1], w2k.shape[1], wdk.shape[0]
    kern = functools.partial(_fused_yolo_kernel, stride=float(stride))

    flops = 2 * b * (9 * (c0 * hw * m1 + c1 * c0 * m1)
                     + 9 * (c1 * m1 * m2 + c2 * c1 * m2)
                     + cc * c2 * m2)
    trans = b * (2 * c1 * m1 + 2 * c2 * m2 + cc * m2)
    bytes_acc = 4 * (x2d.size + g1.size + w1k.size + b1.size + g2.size + w2k.size
                     + b2.size + wdk.size + bd.size + cls.size + anch.size + gxy.size
                     + b * cc * m2)

    return pl.pallas_call(
        kern,
        out_shape=jax.ShapeDtypeStruct((b, cc, m2), jnp.float32),
        grid=(b,),
        in_specs=[
            pl.BlockSpec((1, c0, hw), lambda i: (i, 0, 0)),
            pl.BlockSpec(g1.shape, lambda i: (0, 0, 0)),
            pl.BlockSpec(w1k.shape, lambda i: (0, 0, 0)),
            pl.BlockSpec(b1.shape, lambda i: (0, 0)),
            pl.BlockSpec(g2.shape, lambda i: (0, 0, 0)),
            pl.BlockSpec(w2k.shape, lambda i: (0, 0, 0)),
            pl.BlockSpec(b2.shape, lambda i: (0, 0)),
            pl.BlockSpec(wdk.shape, lambda i: (0, 0)),
            pl.BlockSpec(bd.shape, lambda i: (0, 0)),
            pl.BlockSpec(cls.shape, lambda i: (0, 0)),
            pl.BlockSpec(anch.shape, lambda i: (0, 0)),
            pl.BlockSpec(gxy.shape, lambda i: (0, 0)),
        ],
        out_specs=pl.BlockSpec((1, cc, m2), lambda i: (i, 0, 0)),
        compiler_params=pltpu.CompilerParams(dimension_semantics=("parallel",)),
        cost_estimate=pl.CostEstimate(flops=flops, transcendentals=trans,
                                      bytes_accessed=bytes_acc),
    )(x2d, g1, w1k, b1, g2, w2k, b2, wdk, bd, cls, anch, gxy)


# ----------------------------------------------------------------------------
# Tap-gather matrices for a 3x3 / stride-2 / pad-1 conv on flattened spatial.
# ----------------------------------------------------------------------------
def _make_tap_gather(hin, win, ho, wo):
    """(9, hin*win, ho*wo) 0/1 matrices.  x_flat @ G[t] picks tap t of every output
    position; out-of-range sources (the pad-1 border) map to all-zero columns."""
    q = np.arange(ho * wo)
    oy, ox = q // wo, q % wo
    mats = np.zeros((9, hin * win, ho * wo), np.float32)
    for ky in range(3):
        for kx in range(3):
            sy = 2 * oy + ky - 1
            sx = 2 * ox + kx - 1
            ok = (sy >= 0) & (sy < hin) & (sx >= 0) & (sx < win)
            src = sy * win + sx
            mats[ky * 3 + kx, src[ok], q[ok]] = 1.0
    return mats


class DetectMultiBackendPallas:
    """Pallas re-implementation of DetectMultiBackend.forward (pt backend,
    fp16=False, nhwc=False, fuse=True)."""

    def __init__(self, key, ch=3, nc=2, na=3):
        self.pt = True
        self.fp16 = False
        self.nhwc = False          # pt backend -> NCHW at the API boundary
        self.stride = 4.0          # two stride-2 convs
        self.ch, self.nc, self.na = ch, nc, na
        self.no = nc + 5
        self.names = {i: f"class{i}" for i in range(nc)}
        c1, c2 = 8, 16
        self.c1, self.c2 = c1, c2
        cc = na * self.no
        k1, k2, k3, k4, k5, k6 = jax.random.split(key, 6)
        # conv weights in HWIO; BN already fused into weight/bias (fuse=True).
        self.wc1 = 0.1 * jax.random.normal(k1, (3, 3, ch, c1), jnp.float32)
        self.b1 = 0.1 * jax.random.normal(k2, (c1,), jnp.float32)
        self.wc2 = 0.1 * jax.random.normal(k3, (3, 3, c1, c2), jnp.float32)
        self.b2 = 0.1 * jax.random.normal(k4, (c2,), jnp.float32)
        self.wd = 0.1 * jax.random.normal(k5, (c2, cc), jnp.float32)
        self.bd = 0.1 * jax.random.normal(k6, (cc,), jnp.float32)
        self.anchors = jnp.array([[1.25, 1.625], [2.0, 3.75], [4.125, 2.875]],
                                 jnp.float32)
        # kernel-layout weights: (tap, Cout, Cin); detect head as (CC, C2).
        self.w1k = jnp.transpose(self.wc1.reshape(9, ch, c1), (0, 2, 1))
        self.w2k = jnp.transpose(self.wc2.reshape(9, c1, c2), (0, 2, 1))
        self.wdk = self.wd.T
        # tiny per-channel decode columns: class-id within anchor group, anchor*stride.
        cls = np.tile(np.arange(self.no, dtype=np.float32), na)
        anch = np.ones((cc,), np.float32)
        for a in range(na):
            anch[a * self.no + 2] = float(self.anchors[a, 0]) * self.stride
            anch[a * self.no + 3] = float(self.anchors[a, 1]) * self.stride
        self.cls_col = jnp.asarray(cls).reshape(cc, 1)
        self.anch_col = jnp.asarray(anch).reshape(cc, 1)

    def _model(self, im_nchw):
        b, ch, h, w = im_nchw.shape
        ho1, wo1 = (h + 2 - 3) // 2 + 1, (w + 2 - 3) // 2 + 1
        ny, nx = (ho1 + 2 - 3) // 2 + 1, (wo1 + 2 - 3) // 2 + 1
        # NCHW already has channels off the lane axis; flattening H*W is a free view
        # (no transpose, no pad -- padding is folded into the gather matrices).
        x2d = im_nchw.reshape(b, ch, h * w).astype(jnp.float32)
        g1 = jnp.asarray(_make_tap_gather(h, w, ho1, wo1))
        g2 = jnp.asarray(_make_tap_gather(ho1, wo1, ny, nx))
        # per-position (grid - 0.5) rows shared by all anchors: (2, ny*nx)
        q = np.arange(ny * nx)
        gxy = np.stack([(q % nx) - 0.5, (q // nx) - 0.5]).astype(np.float32)
        out = fused_forward(x2d, g1, self.w1k, self.b1.reshape(-1, 1),
                            g2, self.w2k, self.b2.reshape(-1, 1),
                            self.wdk, self.bd.reshape(-1, 1),
                            self.cls_col, self.anch_col, jnp.asarray(gxy),
                            stride=self.stride)
        # (b, na*no, ny*nx) -> (b, na, ny, nx, no) -> (b, na*ny*nx, no) (YOLOv5 order)
        out = out.reshape(b, self.na, self.no, ny, nx)
        out = jnp.transpose(out, (0, 1, 3, 4, 2)).reshape(b, self.na * ny * nx, self.no)
        # real YOLOv5 eval returns (pred, feats); 1-tuple keeps forward() semantics
        return (out,)

    def forward(self, im):
        if self.fp16 and im.dtype != jnp.float16:
            im = im.astype(jnp.float16)
        if self.nhwc:
            im = jnp.transpose(im, (0, 2, 3, 1))
        y = self._model(im)
        if isinstance(y, (list, tuple)):
            return y[0] if len(y) == 1 else list(y)
        return y


# ----------------------------------------------------------------------------
# Pure-JAX reference (no Pallas) for numeric verification
# ----------------------------------------------------------------------------
def reference_forward(m, im):
    f32 = jnp.float32
    hi = jax.lax.Precision.HIGHEST
    x = jnp.transpose(im, (0, 2, 3, 1)).astype(f32)

    def conv_silu(xin, w_hwio, bias):
        y = jax.lax.conv_general_dilated(
            xin, w_hwio, (2, 2), ((1, 1), (1, 1)),
            dimension_numbers=("NHWC", "HWIO", "NHWC"), precision=hi)
        y = y + bias.reshape(1, 1, 1, -1)
        return y * jax.nn.sigmoid(y)

    y1 = conv_silu(x, m.wc1, m.b1)
    y2 = conv_silu(y1, m.wc2, m.b2)
    b, ny, nx, _ = y2.shape
    raw = jnp.einsum("byxc,cd->byxd", y2, m.wd, precision=hi) + m.bd
    s = jax.nn.sigmoid(raw).reshape(b, ny, nx, m.na, m.no)
    gx, gy = jnp.meshgrid(jnp.arange(nx, dtype=f32), jnp.arange(ny, dtype=f32))
    grid = jnp.stack([gx, gy], axis=-1)[None, :, :, None, :]        # (1,ny,nx,1,2)
    anchor_grid = (m.anchors * m.stride)[None, None, None, :, :]    # (1,1,1,na,2)
    xy = (s[..., 0:2] * 2.0 - 0.5 + grid) * m.stride
    wh = (s[..., 2:4] * 2.0) ** 2 * anchor_grid
    out = jnp.concatenate([xy, wh, s[..., 4:]], axis=-1)            # (b,ny,nx,na,no)
    return jnp.transpose(out, (0, 3, 1, 2, 4)).reshape(b, m.na * ny * nx, m.no)


if __name__ == "__main__":
    key = jax.random.PRNGKey(0)
    kparams, kx = jax.random.split(key)
    model = DetectMultiBackendPallas(kparams, ch=3, nc=2, na=3)

    # NCHW input, as DetectMultiBackend.forward expects
    im = jax.random.normal(kx, (2, 3, 16, 16), jnp.float32)

    out = jax.block_until_ready(model.forward(im))
    ref = jax.block_until_ready(reference_forward(model, im))

    assert out.shape == (2, 3 * 4 * 4, 7), out.shape
    err = float(jnp.max(jnp.abs(out - ref)))
    assert jnp.allclose(out, ref, atol=2e-3, rtol=2e-3), err
    # TODO(synk): checkpoint loading / non-pt backends (onnx, trt, tflite, ...) have no Pallas equivalent.
    print("KERNEL_OK")
</pallas_src>

<mosaic_0001>
module attributes {stable_mosaic.version = 11 : i64} {
  func.func @_fused_yolo_kernel(%arg0: i32, %arg1: memref<1x3x256xf32, #tpu.memory_space<vmem>>, %arg2: memref<9x256x64xf32, #tpu.memory_space<vmem>>, %arg3: memref<9x8x3xf32, #tpu.memory_space<vmem>>, %arg4: memref<8x1xf32, #tpu.memory_space<vmem>>, %arg5: memref<9x64x16xf32, #tpu.memory_space<vmem>>, %arg6: memref<9x16x8xf32, #tpu.memory_space<vmem>>, %arg7: memref<16x1xf32, #tpu.memory_space<vmem>>, %arg8: memref<21x16xf32, #tpu.memory_space<vmem>>, %arg9: memref<21x1xf32, #tpu.memory_space<vmem>>, %arg10: memref<21x1xf32, #tpu.memory_space<vmem>>, %arg11: memref<21x1xf32, #tpu.memory_space<vmem>>, %arg12: memref<2x16xf32, #tpu.memory_space<vmem>>, %arg13: memref<1x21x16xf32, #tpu.memory_space<vmem>>) attributes {dimension_semantics = [#tpu.dimension_semantics<parallel>], iteration_bounds = array<i64: 2>, scalar_prefetch = 0 : i64, scratch_operands = 0 : i64, tpu.core_type = #tpu.core_type<tc>, window_params = [{transform_indices = @transform_0, window_bounds = array<i64: 1, 3, 256>}, {pipeline_mode = #tpu.pipeline_mode<synchronous>, transform_indices = @transform_1, window_bounds = array<i64: 9, 256, 64>}, {pipeline_mode = #tpu.pipeline_mode<synchronous>, transform_indices = @transform_2, window_bounds = array<i64: 9, 8, 3>}, {pipeline_mode = #tpu.pipeline_mode<synchronous>, transform_indices = @transform_3, window_bounds = array<i64: 8, 1>}, {pipeline_mode = #tpu.pipeline_mode<synchronous>, transform_indices = @transform_4, window_bounds = array<i64: 9, 64, 16>}, {pipeline_mode = #tpu.pipeline_mode<synchronous>, transform_indices = @transform_5, window_bounds = array<i64: 9, 16, 8>}, {pipeline_mode = #tpu.pipeline_mode<synchronous>, transform_indices = @transform_6, window_bounds = array<i64: 16, 1>}, {pipeline_mode = #tpu.pipeline_mode<synchronous>, transform_indices = @transform_7, window_bounds = array<i64: 21, 16>}, {pipeline_mode = #tpu.pipeline_mode<synchronous>, transform_indices = @transform_8, window_bounds = array<i64: 21, 1>}, {pipeline_mode = #tpu.pipeline_mode<synchronous>, transform_indices = @transform_9, window_bounds = array<i64: 21, 1>}, {pipeline_mode = #tpu.pipeline_mode<synchronous>, transform_indices = @transform_10, window_bounds = array<i64: 21, 1>}, {pipeline_mode = #tpu.pipeline_mode<synchronous>, transform_indices = @transform_11, window_bounds = array<i64: 2, 16>}, {transform_indices = @transform_12, window_bounds = array<i64: 1, 21, 16>}]} {
    %c0 = arith.constant 0 : index
    %c0_0 = arith.constant 0 : index
    %c0_1 = arith.constant 0 : index
    %0 = vector.load %arg1[%c0, %c0_0, %c0_1] : memref<1x3x256xf32, #tpu.memory_space<vmem>>, vector<1x3x256xf32>
    %1 = vector.shape_cast %0 : vector<1x3x256xf32> to vector<3x256xf32>
    %cst = arith.constant 0.000000e+00 : f32
    %2 = vector.broadcast %cst : f32 to vector<8x64xf32>
    %c0_2 = arith.constant 0 : index
    %c0_3 = arith.constant 0 : index
    %c0_4 = arith.constant 0 : index
    %3 = vector.load %arg2[%c0_2, %c0_3, %c0_4] : memref<9x256x64xf32, #tpu.memory_space<vmem>>, vector<1x256x64xf32>
    %4 = vector.shape_cast %3 : vector<1x256x64xf32> to vector<256x64xf32>
    %cst_5 = arith.constant dense<0.000000e+00> : vector<3x64xf32>
    %5 = tpu.matmul %1, %4, %cst_5 {dimension_numbers = #tpu.dot_dimension_numbers<[1], [0], [0], [1], [0, 0, 1, 1], [], []>} : vector<3x256xf32>, vector<256x64xf32>, vector<3x64xf32> -> vector<3x64xf32>
    %c0_6 = arith.constant 0 : index
    %c0_7 = arith.constant 0 : index
    %c0_8 = arith.constant 0 : index
    %6 = vector.load %arg3[%c0_6, %c0_7, %c0_8] : memref<9x8x3xf32, #tpu.memory_space<vmem>>, vector<1x8x3xf32>
    %7 = vector.shape_cast %6 : vector<1x8x3xf32> to vector<8x3xf32>
    %cst_9 = arith.constant dense<0.000000e+00> : vector<8x64xf32>
    %8 = tpu.matmul %7, %5, %cst_9 {dimension_numbers = #tpu.dot_dimension_numbers<[1], [0], [0], [1], [0, 0, 1, 1], [], []>} : vector<8x3xf32>, vector<3x64xf32>, vector<8x64xf32> -> vector<8x64xf32>
    %9 = arith.addf %2, %8 : vector<8x64xf32>
    %c1 = arith.constant 1 : index
    %c0_10 = arith.constant 0 : index
    %c0_11 = arith.constant 0 : index
    %10 = vector.load %arg2[%c1, %c0_10, %c0_11] : memref<9x256x64xf32, #tpu.memory_space<vmem>>, vector<1x256x64xf32>
    %11 = vector.shape_cast %10 : vector<1x256x64xf32> to vector<256x64xf32>
    %cst_12 = arith.constant dense<0.000000e+00> : vector<3x64xf32>
    %12 = tpu.matmul %1, %11, %cst_12 {dimension_numbers = #tpu.dot_dimension_numbers<[1], [0], [0], [1], [0, 0, 1, 1], [], []>} : vector<3x256xf32>, vector<256x64xf32>, vector<3x64xf32> -> vector<3x64xf32>
    %c1_13 = arith.constant 1 : index
    %c0_14 = arith.constant 0 : index
    %c0_15 = arith.constant 0 : index
    %13 = vector.load %arg3[%c1_13, %c0_14, %c0_15] : memref<9x8x3xf32, #tpu.memory_space<vmem>>, vector<1x8x3xf32>
    %14 = vector.shape_cast %13 : vector<1x8x3xf32> to vector<8x3xf32>
    %cst_16 = arith.constant dense<0.000000e+00> : vector<8x64xf32>
    %15 = tpu.matmul %14, %12, %cst_16 {dimension_numbers = #tpu.dot_dimension_numbers<[1], [0], [0], [1], [0, 0, 1, 1], [], []>} : vector<8x3xf32>, vector<3x64xf32>, vector<8x64xf32> -> vector<8x64xf32>
    %16 = arith.addf %9, %15 : vector<8x64xf32>
    %c2 = arith.constant 2 : index
    %c0_17 = arith.constant 0 : index
    %c0_18 = arith.constant 0 : index
    %17 = vector.load %arg2[%c2, %c0_17, %c0_18] : memref<9x256x64xf32, #tpu.memory_space<vmem>>, vector<1x256x64xf32>
    %18 = vector.shape_cast %17 : vector<1x256x64xf32> to vector<256x64xf32>
    %cst_19 = arith.constant dense<0.000000e+00> : vector<3x64xf32>
    %19 = tpu.matmul %1, %18, %cst_19 {dimension_numbers = #tpu.dot_dimension_numbers<[1], [0], [0], [1], [0, 0, 1, 1], [], []>} : vector<3x256xf32>, vector<256x64xf32>, vector<3x64xf32> -> vector<3x64xf32>
    %c2_20 = arith.constant 2 : index
    %c0_21 = arith.constant 0 : index
    %c0_22 = arith.constant 0 : index
    %20 = vector.load %arg3[%c2_20, %c0_21, %c0_22] : memref<9x8x3xf32, #tpu.memory_space<vmem>>, vector<1x8x3xf32>
    %21 = vector.shape_cast %20 : vector<1x8x3xf32> to vector<8x3xf32>
    %cst_23 = arith.constant dense<0.000000e+00> : vector<8x64xf32>
    %22 = tpu.matmul %21, %19, %cst_23 {dimension_numbers = #tpu.dot_dimension_numbers<[1], [0], [0], [1], [0, 0, 1, 1], [], []>} : vector<8x3xf32>, vector<3x64xf32>, vector<8x64xf32> -> vector<8x64xf32>
    %23 = arith.addf %16, %22 : vector<8x64xf32>
    %c3 = arith.constant 3 : index
    %c0_24 = arith.constant 0 : index
    %c0_25 = arith.constant 0 : index
    %24 = vector.load %arg2[%c3, %c0_24, %c0_25] : memref<9x256x64xf32, #tpu.memory_space<vmem>>, vector<1x256x64xf32>
    %25 = vector.shape_cast %24 : vector<1x256x64xf32> to vector<256x64xf32>
    %cst_26 = arith.constant dense<0.000000e+00> : vector<3x64xf32>
    %26 = tpu.matmul %1, %25, %cst_26 {dimension_numbers = #tpu.dot_dimension_numbers<[1], [0], [0], [1], [0, 0, 1, 1], [], []>} : vector<3x256xf32>, vector<256x64xf32>, vector<3x64xf32> -> vector<3x64xf32>
    %c3_27 = arith.constant 3 : index
    %c0_28 = arith.constant 0 : index
    %c0_29 = arith.constant 0 : index
    %27 = vector.load %arg3[%c3_27, %c0_28, %c0_29] : memref<9x8x3xf32, #tpu.memory_space<vmem>>, vector<1x8x3xf32>
    %28 = vector.shape_cast %27 : vector<1x8x3xf32> to vector<8x3xf32>
    %cst_30 = arith.constant dense<0.000000e+00> : vector<8x64xf32>
    %29 = tpu.matmul %28, %26, %cst_30 {dimension_numbers = #tpu.dot_dimension_numbers<[1], [0], [0], [1], [0, 0, 1, 1], [], []>} : vector<8x3xf32>, vector<3x64xf32>, vector<8x64xf32> -> vector<8x64xf32>
    %30 = arith.addf %23, %29 : vector<8x64xf32>
    %c4 = arith.constant 4 : index
    %c0_31 = arith.constant 0 : index
    %c0_32 = arith.constant 0 : index
    %31 = vector.load %arg2[%c4, %c0_31, %c0_32] : memref<9x256x64xf32, #tpu.memory_space<vmem>>, vector<1x256x64xf32>
    %32 = vector.shape_cast %31 : vector<1x256x64xf32> to vector<256x64xf32>
    %cst_33 = arith.constant dense<0.000000e+00> : vector<3x64xf32>
    %33 = tpu.matmul %1, %32, %cst_33 {dimension_numbers = #tpu.dot_dimension_numbers<[1], [0], [0], [1], [0, 0, 1, 1], [], []>} : vector<3x256xf32>, vector<256x64xf32>, vector<3x64xf32> -> vector<3x64xf32>
    %c4_34 = arith.constant 4 : index
    %c0_35 = arith.constant 0 : index
    %c0_36 = arith.constant 0 : index
    %34 = vector.load %arg3[%c4_34, %c0_35, %c0_36] : memref<9x8x3xf32, #tpu.memory_space<vmem>>, vector<1x8x3xf32>
    %35 = vector.shape_cast %34 : vector<1x8x3xf32> to vector<8x3xf32>
    %cst_37 = arith.constant dense<0.000000e+00> : vector<8x64xf32>
    %36 = tpu.matmul %35, %33, %cst_37 {dimension_numbers = #tpu.dot_dimension_numbers<[1], [0], [0], [1], [0, 0, 1, 1], [], []>} : vector<8x3xf32>, vector<3x64xf32>, vector<8x64xf32> -> vector<8x64xf32>
    %37 = arith.addf %30, %36 : vector<8x64xf32>
    %c5 = arith.constant 5 : index
    %c0_38 = arith.constant 0 : index
    %c0_39 = arith.constant 0 : index
    %38 = vector.load %arg2[%c5, %c0_38, %c0_39] : memref<9x256x64xf32, #tpu.memory_space<vmem>>, vector<1x256x64xf32>
    %39 = vector.shape_cast %38 : vector<1x256x64xf32> to vector<256x64xf32>
    %cst_40 = arith.constant dense<0.000000e+00> : vector<3x64xf32>
    %40 = tpu.matmul %1, %39, %cst_40 {dimension_numbers = #tpu.dot_dimension_numbers<[1], [0], [0], [1], [0, 0, 1, 1], [], []>} : vector<3x256xf32>, vector<256x64xf32>, vector<3x64xf32> -> vector<3x64xf32>
    %c5_41 = arith.constant 5 : index
    %c0_42 = arith.constant 0 : index
    %c0_43 = arith.constant 0 : index
    %41 = vector.load %arg3[%c5_41, %c0_42, %c0_43] : memref<9x8x3xf32, #tpu.memory_space<vmem>>, vector<1x8x3xf32>
    %42 = vector.shape_cast %41 : vector<1x8x3xf32> to vector<8x3xf32>
    %cst_44 = arith.constant dense<0.000000e+00> : vector<8x64xf32>
    %43 = tpu.matmul %42, %40, %cst_44 {dimension_numbers = #tpu.dot_dimension_numbers<[1], [0], [0], [1], [0, 0, 1, 1], [], []>} : vector<8x3xf32>, vector<3x64xf32>, vector<8x64xf32> -> vector<8x64xf32>
    %44 = arith.addf %37, %43 : vector<8x64xf32>
    %c6 = arith.constant 6 : index
    %c0_45 = arith.constant 0 : index
    %c0_46 = arith.constant 0 : index
    %45 = vector.load %arg2[%c6, %c0_45, %c0_46] : memref<9x256x64xf32, #tpu.memory_space<vmem>>, vector<1x256x64xf32>
    %46 = vector.shape_cast %45 : vector<1x256x64xf32> to vector<256x64xf32>
    %cst_47 = arith.constant dense<0.000000e+00> : vector<3x64xf32>
    %47 = tpu.matmul %1, %46, %cst_47 {dimension_numbers = #tpu.dot_dimension_numbers<[1], [0], [0], [1], [0, 0, 1, 1], [], []>} : vector<3x256xf32>, vector<256x64xf32>, vector<3x64xf32> -> vector<3x64xf32>
    %c6_48 = arith.constant 6 : index
    %c0_49 = arith.constant 0 : index
    %c0_50 = arith.constant 0 : index
    %48 = vector.load %arg3[%c6_48, %c0_49, %c0_50] : memref<9x8x3xf32, #tpu.memory_space<vmem>>, vector<1x8x3xf32>
    %49 = vector.shape_cast %48 : vector<1x8x3xf32> to vector<8x3xf32>
    %cst_51 = arith.constant dense<0.000000e+00> : vector<8x64xf32>
    %50 = tpu.matmul %49, %47, %cst_51 {dimension_numbers = #tpu.dot_dimension_numbers<[1], [0], [0], [1], [0, 0, 1, 1], [], []>} : vector<8x3xf32>, vector<3x64xf32>, vector<8x64xf32> -> vector<8x64xf32>
    %51 = arith.addf %44, %50 : vector<8x64xf32>
    %c7 = arith.constant 7 : index
    %c0_52 = arith.constant 0 : index
    %c0_53 = arith.constant 0 : index
    %52 = vector.load %arg2[%c7, %c0_52, %c0_53] : memref<9x256x64xf32, #tpu.memory_space<vmem>>, vector<1x256x64xf32>
    %53 = vector.shape_cast %52 : vector<1x256x64xf32> to vector<256x64xf32>
    %cst_54 = arith.constant dense<0.000000e+00> : vector<3x64xf32>
    %54 = tpu.matmul %1, %53, %cst_54 {dimension_numbers = #tpu.dot_dimension_numbers<[1], [0], [0], [1], [0, 0, 1, 1], [], []>} : vector<3x256xf32>, vector<256x64xf32>, vector<3x64xf32> -> vector<3x64xf32>
    %c7_55 = arith.constant 7 : index
    %c0_56 = arith.constant 0 : index
    %c0_57 = arith.constant 0 : index
    %55 = vector.load %arg3[%c7_55, %c0_56, %c0_57] : memref<9x8x3xf32, #tpu.memory_space<vmem>>, vector<1x8x3xf32>
    %56 = vector.shape_cast %55 : vector<1x8x3xf32> to vector<8x3xf32>
    %cst_58 = arith.constant dense<0.000000e+00> : vector<8x64xf32>
    %57 = tpu.matmul %56, %54, %cst_58 {dimension_numbers = #tpu.dot_dimension_numbers<[1], [0], [0], [1], [0, 0, 1, 1], [], []>} : vector<8x3xf32>, vector<3x64xf32>, vector<8x64xf32> -> vector<8x64xf32>
    %58 = arith.addf %51, %57 : vector<8x64xf32>
    %c8 = arith.constant 8 : index
    %c0_59 = arith.constant 0 : index
    %c0_60 = arith.constant 0 : index
    %59 = vector.load %arg2[%c8, %c0_59, %c0_60] : memref<9x256x64xf32, #tpu.memory_space<vmem>>, vector<1x256x64xf32>
    %60 = vector.shape_cast %59 : vector<1x256x64xf32> to vector<256x64xf32>
    %cst_61 = arith.constant dense<0.000000e+00> : vector<3x64xf32>
    %61 = tpu.matmul %1, %60, %cst_61 {dimension_numbers = #tpu.dot_dimension_numbers<[1], [0], [0], [1], [0, 0, 1, 1], [], []>} : vector<3x256xf32>, vector<256x64xf32>, vector<3x64xf32> -> vector<3x64xf32>
    %c8_62 = arith.constant 8 : index
    %c0_63 = arith.constant 0 : index
    %c0_64 = arith.constant 0 : index
    %62 = vector.load %arg3[%c8_62, %c0_63, %c0_64] : memref<9x8x3xf32, #tpu.memory_space<vmem>>, vector<1x8x3xf32>
    %63 = vector.shape_cast %62 : vector<1x8x3xf32> to vector<8x3xf32>
    %cst_65 = arith.constant dense<0.000000e+00> : vector<8x64xf32>
    %64 = tpu.matmul %63, %61, %cst_65 {dimension_numbers = #tpu.dot_dimension_numbers<[1], [0], [0], [1], [0, 0, 1, 1], [], []>} : vector<8x3xf32>, vector<3x64xf32>, vector<8x64xf32> -> vector<8x64xf32>
    %65 = arith.addf %58, %64 : vector<8x64xf32>
    %c0_66 = arith.constant 0 : index
    %c0_67 = arith.constant 0 : index
    %66 = vector.load %arg4[%c0_66, %c0_67] : memref<8x1xf32, #tpu.memory_space<vmem>>, vector<8x1xf32>
    %67 = vector.broadcast %66 : vector<8x1xf32> to vector<8x64xf32>
    %68 = arith.addf %65, %67 : vector<8x64xf32>
    %69 = arith.negf %68 : vector<8x64xf32>
    %70 = math.exp %69 : vector<8x64xf32>
    %cst_68 = arith.constant 1.000000e+00 : f32
    %71 = vector.broadcast %cst_68 : f32 to vector<8x64xf32>
    %72 = arith.addf %71, %70 : vector<8x64xf32>
    %73 = arith.divf %71, %72 : vector<8x64xf32>
    %74 = arith.mulf %68, %73 : vector<8x64xf32>
    %cst_69 = arith.constant 0.000000e+00 : f32
    %75 = vector.broadcast %cst_69 : f32 to vector<16x16xf32>
    %c0_70 = arith.constant 0 : index
    %c0_71 = arith.constant 0 : index
    %c0_72 = arith.constant 0 : index
    %76 = vector.load %arg5[%c0_70, %c0_71, %c0_72] : memref<9x64x16xf32, #tpu.memory_space<vmem>>, vector<1x64x16xf32>
    %77 = vector.shape_cast %76 : vector<1x64x16xf32> to vector<64x16xf32>
    %cst_73 = arith.constant dense<0.000000e+00> : vector<8x16xf32>
    %78 = tpu.matmul %74, %77, %cst_73 {dimension_numbers = #tpu.dot_dimension_numbers<[1], [0], [0], [1], [0, 0, 1, 1], [], []>} : vector<8x64xf32>, vector<64x16xf32>, vector<8x16xf32> -> vector<8x16xf32>
    %c0_74 = arith.constant 0 : index
    %c0_75 = arith.constant 0 : index
    %c0_76 = arith.constant 0 : index
    %79 = vector.load %arg6[%c0_74, %c0_75, %c0_76] : memref<9x16x8xf32, #tpu.memory_space<vmem>>, vector<1x16x8xf32>
    %80 = vector.shape_cast %79 : vector<1x16x8xf32> to vector<16x8xf32>
    %cst_77 = arith.constant dense<0.000000e+00> : vector<16x16xf32>
    %81 = tpu.matmul %80, %78, %cst_77 {dimension_numbers = #tpu.dot_dimension_numbers<[1], [0], [0], [1], [0, 0, 1, 1], [], []>} : vector<16x8xf32>, vector<8x16xf32>, vector<16x16xf32> -> vector<16x16xf32>
    %82 = arith.addf %75, %81 : vector<16x16xf32>
    %c1_78 = arith.constant 1 : index
    %c0_79 = arith.constant 0 : index
    %c0_80 = arith.constant 0 : index
    %83 = vector.load %arg5[%c1_78, %c0_79, %c0_80] : memref<9x64x16xf32, #tpu.memory_space<vmem>>, vector<1x64x16xf32>
    %84 = vector.shape_cast %83 : vector<1x64x16xf32> to vector<64x16xf32>
    %cst_81 = arith.constant dense<0.000000e+00> : vector<8x16xf32>
    %85 = tpu.matmul %74, %84, %cst_81 {dimension_numbers = #tpu.dot_dimension_numbers<[1], [0], [0], [1], [0, 0, 1, 1], [], []>} : vector<8x64xf32>, vector<64x16xf32>, vector<8x16xf32> -> vector<8x16xf32>
    %c1_82 = arith.constant 1 : index
    %c0_83 = arith.constant 0 : index
    %c0_84 = arith.constant 0 : index
    %86 = vector.load %arg6[%c1_82, %c0_83, %c0_84] : memref<9x16x8xf32, #tpu.memory_space<vmem>>, vector<1x16x8xf32>
    %87 = vector.shape_cast %86 : vector<1x16x8xf32> to vector<16x8xf32>
    %cst_85 = arith.constant dense<0.000000e+00> : vector<16x16xf32>
    %88 = tpu.matmul %87, %85, %cst_85 {dimension_numbers = #tpu.dot_dimension_numbers<[1], [0], [0], [1], [0, 0, 1, 1], [], []>} : vector<16x8xf32>, vector<8x16xf32>, vector<16x16xf32> -> vector<16x16xf32>
    %89 = arith.addf %82, %88 : vector<16x16xf32>
    %c2_86 = arith.constant 2 : index
    %c0_87 = arith.constant 0 : index
    %c0_88 = arith.constant 0 : index
    %90 = vector.load %arg5[%c2_86, %c0_87, %c0_88] : memref<9x64x16xf32, #tpu.memory_space<vmem>>, vector<1x64x16xf32>
    %91 = vector.shape_cast %90 : vector<1x64x16xf32> to vector<64x16xf32>
    %cst_89 = arith.constant dense<0.000000e+00> : vector<8x16xf32>
    %92 = tpu.matmul %74, %91, %cst_89 {dimension_numbers = #tpu.dot_dimension_numbers<[1], [0], [0], [1], [0, 0, 1, 1], [], []>} : vector<8x64xf32>, vector<64x16xf32>, vector<8x16xf32> -> vector<8x16xf32>
    %c2_90 = arith.constant 2 : index
    %c0_91 = arith.constant 0 : index
    %c0_92 = arith.constant 0 : index
    %93 = vector.load %arg6[%c2_90, %c0_91, %c0_92] : memref<9x16x8xf32, #tpu.memory_space<vmem>>, vector<1x16x8xf32>
    %94 = vector.shape_cast %93 : vector<1x16x8xf32> to vector<16x8xf32>
    %cst_93 = arith.constant dense<0.000000e+00> : vector<16x16xf32>
    %95 = tpu.matmul %94, %92, %cst_93 {dimension_numbers = #tpu.dot_dimension_numbers<[1], [0], [0], [1], [0, 0, 1, 1], [], []>} : vector<16x8xf32>, vector<8x16xf32>, vector<16x16xf32> -> vector<16x16xf32>
    %96 = arith.addf %89, %95 : vector<16x16xf32>
    %c3_94 = arith.constant 3 : index
    %c0_95 = arith.constant 0 : index
    %c0_96 = arith.constant 0 : index
    %97 = vector.load %arg5[%c3_94, %c0_95, %c0_96] : memref<9x64x16xf32, #tpu.memory_space<vmem>>, vector<1x64x16xf32>
    %98 = vector.shape_cast %97 : vector<1x64x16xf32> to vector<64x16xf32>
    %cst_97 = arith.constant dense<0.000000e+00> : vector<8x16xf32>
    %99 = tpu.matmul %74, %98, %cst_97 {dimension_numbers = #tpu.dot_dimension_numbers<[1], [0], [0], [1], [0, 0, 1, 1], [], []>} : vector<8x64xf32>, vector<64x16xf32>, vector<8x16xf32> -> vector<8x16xf32>
    %c3_98 = arith.constant 3 : index
    %c0_99 = arith.constant 0 : index
    %c0_100 = arith.constant 0 : index
    %100 = vector.load %arg6[%c3_98, %c0_99, %c0_100] : memref<9x16x8xf32, #tpu.memory_space<vmem>>, vector<1x16x8xf32>
    %101 = vector.shape_cast %100 : vector<1x16x8xf32> to vector<16x8xf32>
    %cst_101 = arith.constant dense<0.000000e+00> : vector<16x16xf32>
    %102 = tpu.matmul %101, %99, %cst_101 {dimension_numbers = #tpu.dot_dimension_numbers<[1], [0], [0], [1], [0, 0, 1, 1], [], []>} : vector<16x8xf32>, vector<8x16xf32>, vector<16x16xf32> -> vector<16x16xf32>
    %103 = arith.addf %96, %102 : vector<16x16xf32>
    %c4_102 = arith.constant 4 : index
    %c0_103 = arith.constant 0 : index
    %c0_104 = arith.constant 0 : index
    %104 = vector.load %arg5[%c4_102, %c0_103, %c0_104] : memref<9x64x16xf32, #tpu.memory_space<vmem>>, vector<1x64x16xf32>
    %105 = vector.shape_cast %104 : vector<1x64x16xf32> to vector<64x16xf32>
    %cst_105 = arith.constant dense<0.000000e+00> : vector<8x16xf32>
    %106 = tpu.matmul %74, %105, %cst_105 {dimension_numbers = #tpu.dot_dimension_numbers<[1], [0], [0], [1], [0, 0, 1, 1], [], []>} : vector<8x64xf32>, vector<64x16xf32>, vector<8x16xf32> -> vector<8x16xf32>
    %c4_106 = arith.constant 4 : index
    %c0_107 = arith.constant 0 : index
    %c0_108 = arith.constant 0 : index
    %107 = vector.load %arg6[%c4_106, %c0_107, %c0_108] : memref<9x16x8xf32, #tpu.memory_space<vmem>>, vector<1x16x8xf32>
    %108 = vector.shape_cast %107 : vector<1x16x8xf32> to vector<16x8xf32>
    %cst_109 = arith.constant dense<0.000000e+00> : vector<16x16xf32>
    %109 = tpu.matmul %108, %106, %cst_109 {dimension_numbers = #tpu.dot_dimension_numbers<[1], [0], [0], [1], [0, 0, 1, 1], [], []>} : vector<16x8xf32>, vector<8x16xf32>, vector<16x16xf32> -> vector<16x16xf32>
    %110 = arith.addf %103, %109 : vector<16x16xf32>
    %c5_110 = arith.constant 5 : index
    %c0_111 = arith.constant 0 : index
    %c0_112 = arith.constant 0 : index
    %111 = vector.load %arg5[%c5_110, %c0_111, %c0_112] : memref<9x64x16xf32, #tpu.memory_space<vmem>>, vector<1x64x16xf32>
    %112 = vector.shape_cast %111 : vector<1x64x16xf32> to vector<64x16xf32>
    %cst_113 = arith.constant dense<0.000000e+00> : vector<8x16xf32>
    %113 = tpu.matmul %74, %112, %cst_113 {dimension_numbers = #tpu.dot_dimension_numbers<[1], [0], [0], [1], [0, 0, 1, 1], [], []>} : vector<8x64xf32>, vector<64x16xf32>, vector<8x16xf32> -> vector<8x16xf32>
    %c5_114 = arith.constant 5 : index
    %c0_115 = arith.constant 0 : index
    %c0_116 = arith.constant 0 : index
    %114 = vector.load %arg6[%c5_114, %c0_115, %c0_116] : memref<9x16x8xf32, #tpu.memory_space<vmem>>, vector<1x16x8xf32>
    %115 = vector.shape_cast %114 : vector<1x16x8xf32> to vector<16x8xf32>
    %cst_117 = arith.constant dense<0.000000e+00> : vector<16x16xf32>
    %116 = tpu.matmul %115, %113, %cst_117 {dimension_numbers = #tpu.dot_dimension_numbers<[1], [0], [0], [1], [0, 0, 1, 1], [], []>} : vector<16x8xf32>, vector<8x16xf32>, vector<16x16xf32> -> vector<16x16xf32>
    %117 = arith.addf %110, %116 : vector<16x16xf32>
    %c6_118 = arith.constant 6 : index
    %c0_119 = arith.constant 0 : index
    %c0_120 = arith.constant 0 : index
    %118 = vector.load %arg5[%c6_118, %c0_119, %c0_120] : memref<9x64x16xf32, #tpu.memory_space<vmem>>, vector<1x64x16xf32>
    %119 = vector.shape_cast %118 : vector<1x64x16xf32> to vector<64x16xf32>
    %cst_121 = arith.constant dense<0.000000e+00> : vector<8x16xf32>
    %120 = tpu.matmul %74, %119, %cst_121 {dimension_numbers = #tpu.dot_dimension_numbers<[1], [0], [0], [1], [0, 0, 1, 1], [], []>} : vector<8x64xf32>, vector<64x16xf32>, vector<8x16xf32> -> vector<8x16xf32>
    %c6_122 = arith.constant 6 : index
    %c0_123 = arith.constant 0 : index
    %c0_124 = arith.constant 0 : index
    %121 = vector.load %arg6[%c6_122, %c0_123, %c0_124] : memref<9x16x8xf32, #tpu.memory_space<vmem>>, vector<1x16x8xf32>
    %122 = vector.shape_cast %121 : vector<1x16x8xf32> to vector<16x8xf32>
    %cst_125 = arith.constant dense<0.000000e+00> : vector<16x16xf32>
    %123 = tpu.matmul %122, %120, %cst_125 {dimension_numbers = #tpu.dot_dimension_numbers<[1], [0], [0], [1], [0, 0, 1, 1], [], []>} : vector<16x8xf32>, vector<8x16xf32>, vector<16x16xf32> -> vector<16x16xf32>
    %124 = arith.addf %117, %123 : vector<16x16xf32>
    %c7_126 = arith.constant 7 : index
    %c0_127 = arith.constant 0 : index
    %c0_128 = arith.constant 0 : index
    %125 = vector.load %arg5[%c7_126, %c0_127, %c0_128] : memref<9x64x16xf32, #tpu.memory_space<vmem>>, vector<1x64x16xf32>
    %126 = vector.shape_cast %125 : vector<1x64x16xf32> to vector<64x16xf32>
    %cst_129 = arith.constant dense<0.000000e+00> : vector<8x16xf32>
    %127 = tpu.matmul %74, %126, %cst_129 {dimension_numbers = #tpu.dot_dimension_numbers<[1], [0], [0], [1], [0, 0, 1, 1], [], []>} : vector<8x64xf32>, vector<64x16xf32>, vector<8x16xf32> -> vector<8x16xf32>
    %c7_130 = arith.constant 7 : index
    %c0_131 = arith.constant 0 : index
    %c0_132 = arith.constant 0 : index
    %128 = vector.load %arg6[%c7_130, %c0_131, %c0_132] : memref<9x16x8xf32, #tpu.memory_space<vmem>>, vector<1x16x8xf32>
    %129 = vector.shape_cast %128 : vector<1x16x8xf32> to vector<16x8xf32>
    %cst_133 = arith.constant dense<0.000000e+00> : vector<16x16xf32>
    %130 = tpu.matmul %129, %127, %cst_133 {dimension_numbers = #tpu.dot_dimension_numbers<[1], [0], [0], [1], [0, 0, 1, 1], [], []>} : vector<16x8xf32>, vector<8x16xf32>, vector<16x16xf32> -> vector<16x16xf32>
    %131 = arith.addf %124, %130 : vector<16x16xf32>
    %c8_134 = arith.constant 8 : index
    %c0_135 = arith.constant 0 : index
    %c0_136 = arith.constant 0 : index
    %132 = vector.load %arg5[%c8_134, %c0_135, %c0_136] : memref<9x64x16xf32, #tpu.memory_space<vmem>>, vector<1x64x16xf32>
    %133 = vector.shape_cast %132 : vector<1x64x16xf32> to vector<64x16xf32>
    %cst_137 = arith.constant dense<0.000000e+00> : vector<8x16xf32>
    %134 = tpu.matmul %74, %133, %cst_137 {dimension_numbers = #tpu.dot_dimension_numbers<[1], [0], [0], [1], [0, 0, 1, 1], [], []>} : vector<8x64xf32>, vector<64x16xf32>, vector<8x16xf32> -> vector<8x16xf32>
    %c8_138 = arith.constant 8 : index
    %c0_139 = arith.constant 0 : index
    %c0_140 = arith.constant 0 : index
    %135 = vector.load %arg6[%c8_138, %c0_139, %c0_140] : memref<9x16x8xf32, #tpu.memory_space<vmem>>, vector<1x16x8xf32>
    %136 = vector.shape_cast %135 : vector<1x16x8xf32> to vector<16x8xf32>
    %cst_141 = arith.constant dense<0.000000e+00> : vector<16x16xf32>
    %137 = tpu.matmul %136, %134, %cst_141 {dimension_numbers = #tpu.dot_dimension_numbers<[1], [0], [0], [1], [0, 0, 1, 1], [], []>} : vector<16x8xf32>, vector<8x16xf32>, vector<16x16xf32> -> vector<16x16xf32>
    %138 = arith.addf %131, %137 : vector<16x16xf32>
    %c0_142 = arith.constant 0 : index
    %c0_143 = arith.constant 0 : index
    %139 = vector.load %arg7[%c0_142, %c0_143] : memref<16x1xf32, #tpu.memory_space<vmem>>, vector<16x1xf32>
    %140 = vector.broadcast %139 : vector<16x1xf32> to vector<16x16xf32>
    %141 = arith.addf %138, %140 : vector<16x16xf32>
    %142 = arith.negf %141 : vector<16x16xf32>
    %143 = math.exp %142 : vector<16x16xf32>
    %cst_144 = arith.constant 1.000000e+00 : f32
    %144 = vector.broadcast %cst_144 : f32 to vector<16x16xf32>
    %145 = arith.addf %144, %143 : vector<16x16xf32>
    %146 = arith.divf %144, %145 : vector<16x16xf32>
    %147 = arith.mulf %141, %146 : vector<16x16xf32>
    %c0_145 = arith.constant 0 : index
    %c0_146 = arith.constant 0 : index
    %148 = vector.load %arg8[%c0_145, %c0_146] : memref<21x16xf32, #tpu.memory_space<vmem>>, vector<21x16xf32>
    %cst_147 = arith.constant dense<0.000000e+00> : vector<21x16xf32>
    %149 = tpu.matmul %148, %147, %cst_147 {dimension_numbers = #tpu.dot_dimension_numbers<[1], [0], [0], [1], [0, 0, 1, 1], [], []>} : vector<21x16xf32>, vector<16x16xf32>, vector<21x16xf32> -> vector<21x16xf32>
    %c0_148 = arith.constant 0 : index
    %c0_149 = arith.constant 0 : index
    %150 = vector.load %arg9[%c0_148, %c0_149] : memref<21x1xf32, #tpu.memory_space<vmem>>, vector<21x1xf32>
    %151 = vector.broadcast %150 : vector<21x1xf32> to vector<21x16xf32>
    %152 = arith.addf %149, %151 : vector<21x16xf32>
    %153 = arith.negf %152 : vector<21x16xf32>
    %154 = math.exp %153 : vector<21x16xf32>
    %cst_150 = arith.constant 1.000000e+00 : f32
    %155 = vector.broadcast %cst_150 : f32 to vector<21x16xf32>
    %156 = arith.addf %155, %154 : vector<21x16xf32>
    %157 = arith.divf %155, %156 : vector<21x16xf32>
    %cst_151 = arith.constant 2.000000e+00 : f32
    %158 = vector.broadcast %cst_151 : f32 to vector<21x16xf32>
    %159 = arith.mulf %157, %158 : vector<21x16xf32>
    %c0_152 = arith.constant 0 : index
    %c0_153 = arith.constant 0 : index
    %160 = vector.load %arg12[%c0_152, %c0_153] : memref<2x16xf32, #tpu.memory_space<vmem>>, vector<2x16xf32>
    %161 = vector.extract_strided_slice %160 {offsets = [0, 0], sizes = [1, 16], strides = [1, 1]} : vector<2x16xf32> to vector<1x16xf32>
    %162 = vector.extract_strided_slice %160 {offsets = [1, 0], sizes = [1, 16], strides = [1, 1]} : vector<2x16xf32> to vector<1x16xf32>
    %c0_154 = arith.constant 0 : index
    %c0_155 = arith.constant 0 : index
    %163 = vector.load %arg10[%c0_154, %c0_155] : memref<21x1xf32, #tpu.memory_space<vmem>>, vector<21x1xf32>
    %cst_156 = arith.constant 5.000000e-01 : f32
    %164 = vector.broadcast %cst_156 : f32 to vector<21x1xf32>
    %165 = arith.cmpf olt, %163, %164 : vector<21x1xf32>
    %cst_157 = arith.constant 1.500000e+00 : f32
    %166 = vector.broadcast %cst_157 : f32 to vector<21x1xf32>
    %167 = arith.cmpf olt, %163, %166 : vector<21x1xf32>
    %cst_158 = arith.constant 0.000000e+00 : f32
    %168 = vector.shape_cast %167 : vector<21x1xi1> to vector<21x1xi1>
    %169 = vector.broadcast %168 : vector<21x1xi1> to vector<21x16xi1>
    %170 = vector.shape_cast %162 : vector<1x16xf32> to vector<1x16xf32>
    %171 = vector.broadcast %170 : vector<1x16xf32> to vector<21x16xf32>
    %172 = vector.broadcast %cst_158 : f32 to vector<21x16xf32>
    %173 = arith.select %169, %171, %172 : vector<21x16xi1>, vector<21x16xf32>
    %174 = vector.shape_cast %165 : vector<21x1xi1> to vector<21x1xi1>
    %175 = vector.broadcast %174 : vector<21x1xi1> to vector<21x16xi1>
    %176 = vector.shape_cast %161 : vector<1x16xf32> to vector<1x16xf32>
    %177 = vector.broadcast %176 : vector<1x16xf32> to vector<21x16xf32>
    %178 = arith.select %175, %177, %173 : vector<21x16xi1>, vector<21x16xf32>
    %179 = arith.addf %159, %178 : vector<21x16xf32>
    %cst_159 = arith.constant 4.000000e+00 : f32
    %180 = vector.broadcast %cst_159 : f32 to vector<21x16xf32>
    %181 = arith.mulf %179, %180 : vector<21x16xf32>
    %182 = arith.mulf %159, %159 : vector<21x16xf32>
    %c0_160 = arith.constant 0 : index
    %c0_161 = arith.constant 0 : index
    %183 = vector.load %arg11[%c0_160, %c0_161] : memref<21x1xf32, #tpu.memory_space<vmem>>, vector<21x1xf32>
    %184 = vector.broadcast %183 : vector<21x1xf32> to vector<21x16xf32>
    %185 = arith.mulf %182, %184 : vector<21x16xf32>
    %cst_162 = arith.constant 1.500000e+00 : f32
    %186 = vector.broadcast %cst_162 : f32 to vector<21x1xf32>
    %187 = arith.cmpf olt, %163, %186 : vector<21x1xf32>
    %cst_163 = arith.constant 3.500000e+00 : f32
    %188 = vector.broadcast %cst_163 : f32 to vector<21x1xf32>
    %189 = arith.cmpf olt, %163, %188 : vector<21x1xf32>
    %190 = vector.shape_cast %189 : vector<21x1xi1> to vector<21x1xi1>
    %191 = vector.broadcast %190 : vector<21x1xi1> to vector<21x16xi1>
    %192 = arith.select %191, %185, %157 : vector<21x16xi1>, vector<21x16xf32>
    %193 = vector.shape_cast %187 : vector<21x1xi1> to vector<21x1xi1>
    %194 = vector.broadcast %193 : vector<21x1xi1> to vector<21x16xi1>
    %195 = arith.select %194, %181, %192 : vector<21x16xi1>, vector<21x16xf32>
    %c0_164 = arith.constant 0 : index
    %c0_165 = arith.constant 0 : index
    %c0_166 = arith.constant 0 : index
    %196 = vector.load %arg13[%c0_164, %c0_165, %c0_166] : memref<1x21x16xf32, #tpu.memory_space<vmem>>, vector<1x21x16xf32>
    %197 = vector.shape_cast %196 : vector<1x21x16xf32> to vector<21x16xf32>
    %198 = vector.shape_cast %195 : vector<21x16xf32> to vector<1x21x16xf32>
    tpu.vector_store %arg13[%c0_164, %c0_165, %c0_166], %198 {strides = array<i32>} : memref<1x21x16xf32, #tpu.memory_space<vmem>>, vector<1x21x16xf32>,
    return
  }
  func.func @transform_0(%arg0: i32) -> (i32, i32, i32) {
    %c0_i32 = arith.constant 0 : i32
    %c0_i32_0 = arith.constant 0 : i32
    %c0_i32_1 = arith.constant 0 : i32
    return %arg0, %c0_i32, %c0_i32_0 : i32, i32, i32
  }
  func.func @transform_1(%arg0: i32) -> (i32, i32, i32) {
    %c0_i32 = arith.constant 0 : i32
    %c0_i32_0 = arith.constant 0 : i32
    %c0_i32_1 = arith.constant 0 : i32
    %c0_i32_2 = arith.constant 0 : i32
    return %c0_i32, %c0_i32_0, %c0_i32_1 : i32, i32, i32
  }
  func.func @transform_2(%arg0: i32) -> (i32, i32, i32) {
    %c0_i32 = arith.constant 0 : i32
    %c0_i32_0 = arith.constant 0 : i32
    %c0_i32_1 = arith.constant 0 : i32
    %c0_i32_2 = arith.constant 0 : i32
    return %c0_i32, %c0_i32_0, %c0_i32_1 : i32, i32, i32
  }
  func.func @transform_3(%arg0: i32) -> (i32, i32) {
    %c0_i32 = arith.constant 0 : i32
    %c0_i32_0 = arith.constant 0 : i32
    %c0_i32_1 = arith.constant 0 : i32
    return %c0_i32, %c0_i32_0 : i32, i32
  }
  func.func @transform_4(%arg0: i32) -> (i32, i32, i32) {
    %c0_i32 = arith.constant 0 : i32
    %c0_i32_0 = arith.constant 0 : i32
    %c0_i32_1 = arith.constant 0 : i32
    %c0_i32_2 = arith.constant 0 : i32
    return %c0_i32, %c0_i32_0, %c0_i32_1 : i32, i32, i32
  }
  func.func @transform_5(%arg0: i32) -> (i32, i32, i32) {
    %c0_i32 = arith.constant 0 : i32
    %c0_i32_0 = arith.constant 0 : i32
    %c0_i32_1 = arith.constant 0 : i32
    %c0_i32_2 = arith.constant 0 : i32
    return %c0_i32, %c0_i32_0, %c0_i32_1 : i32, i32, i32
  }
  func.func @transform_6(%arg0: i32) -> (i32, i32) {
    %c0_i32 = arith.constant 0 : i32
    %c0_i32_0 = arith.constant 0 : i32
    %c0_i32_1 = arith.constant 0 : i32
    return %c0_i32, %c0_i32_0 : i32, i32
  }
  func.func @transform_7(%arg0: i32) -> (i32, i32) {
    %c0_i32 = arith.constant 0 : i32
    %c0_i32_0 = arith.constant 0 : i32
    %c0_i32_1 = arith.constant 0 : i32
    return %c0_i32, %c0_i32_0 : i32, i32
  }
  func.func @transform_8(%arg0: i32) -> (i32, i32) {
    %c0_i32 = arith.constant 0 : i32
    %c0_i32_0 = arith.constant 0 : i32
    %c0_i32_1 = arith.constant 0 : i32
    return %c0_i32, %c0_i32_0 : i32, i32
  }
  func.func @transform_9(%arg0: i32) -> (i32, i32) {
    %c0_i32 = arith.constant 0 : i32
    %c0_i32_0 = arith.constant 0 : i32
    %c0_i32_1 = arith.constant 0 : i32
    return %c0_i32, %c0_i32_0 : i32, i32
  }
  func.func @transform_10(%arg0: i32) -> (i32, i32) {
    %c0_i32 = arith.constant 0 : i32
    %c0_i32_0 = arith.constant 0 : i32
    %c0_i32_1 = arith.constant 0 : i32
    return %c0_i32, %c0_i32_0 : i32, i32
  }
  func.func @transform_11(%arg0: i32) -> (i32, i32) {
    %c0_i32 = arith.constant 0 : i32
    %c0_i32_0 = arith.constant 0 : i32
    %c0_i32_1 = arith.constant 0 : i32
    return %c0_i32, %c0_i32_0 : i32, i32
  }
  func.func @transform_12(%arg0: i32) -> (i32, i32, i32) {
    %c0_i32 = arith.constant 0 : i32
    %c0_i32_0 = arith.constant 0 : i32
    %c0_i32_1 = arith.constant 0 : i32
    return %arg0, %c0_i32, %c0_i32_0 : i32, i32, i32
  }
}

</mosaic_0001>

<bundles_post_ra>
// kernel: tpu_custom_call.1
= control target key start
LH: loop header
LB: loop body
LE: loop exit
PB: predicated region body
PF: predicated region fallthrough
CT: control target
= control target key end

     0   :  { %s5541_s21 = smov 0   ;;  %s7017_s0 = inlined_call_operand.vmem [shape: f32[2,3,256], index: 0, kind: input, shape index: {}]   ;;  %s7018_s1 = inlined_call_operand.vmem [shape: f32[9,256,64], index: 1, kind: input, shape index: {}]   ;;  %s7019_s2 = inlined_call_operand.vmem [shape: f32[9,8,3], index: 2, kind: input, shape index: {}]   ;;  %s7020_s3 = inlined_call_operand.vmem [shape: f32[8,1], index: 3, kind: input, shape index: {}]   ;;  %s7021_s4 = inlined_call_operand.vmem [shape: f32[9,64,16], index: 4, kind: input, shape index: {}]   ;;  %s7022_s5 = inlined_call_operand.vmem [shape: f32[9,16,8], index: 5, kind: input, shape index: {}]   ;;  %s7023_s6 = inlined_call_operand.vmem [shape: f32[16,1], index: 6, kind: input, shape index: {}]   ;;  %s7024_s7 = inlined_call_operand.vmem [shape: f32[21,16], index: 7, kind: input, shape index: {}]   ;;  %s7025_s8 = inlined_call_operand.vmem [shape: f32[21,1], index: 8, kind: input, shape index: {}]   ;;  %s7026_s9 = inlined_call_operand.vmem [shape: f32[21,1], index: 9, kind: input, shape index: {}]   ;;  %s7027_s10 = inlined_call_operand.vmem [shape: f32[21,1], index: 10, kind: input, shape index: {}]   ;;  %s7028_s11 = inlined_call_operand.vmem [shape: f32[2,16], index: 11, kind: input, shape index: {}]   ;;  %s7029_s12 = inlined_call_operand.vmem [shape: f32[2,21,16], index: 12, kind: output, shape index: {}]  }
   0x1 LB: > { %s3879_s22 = sadd.s32 4294967295, %s5470_s21   ;;  %p3883_p0 = scmp.ge.s32.totalorder %s5470_s21, 1  ;;  %s5470_s21 = sphi %s5541_s21, %s22_s21  }
   0x2   : > { %p362_p1 = scmp.lt.s32.totalorder %s5470_s21, 3 }
   0x4   : > { %p363_p2 = pnand %p3883_p0, %p362_p1 }
   0x5   : > { %v3903_v0 = vld [vmem:[%s7018_s1 + $0x180] sm:$0xff] (!%p363_p2)  ;;  %v3904_v1 = vld [vmem:[%s7018_s1 + $0x188] sm:$0xff] (!%p363_p2)  ;;  %v3905_v11 = vld [vmem:[%s7018_s1 + $0x190] sm:$0xff] (!%p363_p2)  ;;  %p5623_p3 = scmp.lt.s32.totalorder (!%p363_p2), %s3879_s22, 1  ;;  %vm5473_vm0 = vmmov (!%p363_p2), 0   ;;  %vm630_vm1 = vcmask (!%p363_p2), 1042432  }
   0x6   : > { %366 = sbr.rel (%p363_p2) target bundleno = 3703 (0xe77), region = 68  ;;  %v431_v2 = vld [vmem:[%s7018_s1 + $0x80] sm:$0xff] (!%p363_p2)  ;;  %v5040_v3 = vpack.c.bf16 (!%p363_p2), %v3904_v1, %v3903_v0  ;;  %v432_v4 = vld [vmem:[%s7018_s1 + $0x88] sm:$0xff] (!%p363_p2)  ;;  %v3906_v13 = vld [vmem:[%s7018_s1 + $0x198] sm:$0xff] (!%p363_p2)  ;;  %vm626_vm2 = vcmask (!%p363_p2), 23552   ;;  %vm2076_vm10 = vcmask (!%p363_p2), 523264  }
   0x7   : > { %v3887_v5 = vld [vmem:[%s7018_s1 + $0x100] sm:$0xff] (!%p363_p2)  ;;  %v3888_v6 = vld [vmem:[%s7018_s1 + $0x108] sm:$0xff] (!%p363_p2)  ;;  %v5008_v7 = vpack.c.bf16 (!%p363_p2), %v432_v4, %v431_v2  ;;  %v433_v14 = vld [vmem:[%s7018_s1 + $0x90] sm:$0xff] (!%p363_p2)  ;;  %v5044_v16 = vpack.c.bf16 (!%p363_p2), %v3906_v13, %v3905_v11  ;;  %vm2234_vm11 = vcmask (!%p363_p2), 64512   ;;  %vm3601_vm14 = vcmask (!%p363_p2), 130048  }
   0x8   : > { %v5042_v8 = vpack.c.bf16 (!%p363_p2), %v3888_v6, %v3887_v5  ;;  %v415_v9 = vld [vmem:[%s7018_s1] sm:$0xff] (!%p363_p2)  ;;  %v416_v10 = vld [vmem:[%s7018_s1 + $0x8] sm:$0xff] (!%p363_p2)  ;;  %5041 = vmatprep.subr.bf16.mxu1 (!%p363_p2), %v5040_v3  ;;  %v434_v15 = vld [vmem:[%s7018_s1 + $0x98] sm:$0xff] (!%p363_p2) }
   0x9   : > { %v5010_v12 = vpack.c.bf16 (!%p363_p2), %v416_v10, %v415_v9  ;;  %5009 = vmatprep.subr.bf16.mxu0 (!%p363_p2), %v5008_v7  ;;  %v5012_v17 = vpack.c.bf16 (!%p363_p2), %v434_v15, %v433_v14  ;;  %v3889_v18 = vld [vmem:[%s7018_s1 + $0x110] sm:$0xff] (!%p363_p2)  ;;  %v3890_v19 = vld [vmem:[%s7018_s1 + $0x118] sm:$0xff] (!%p363_p2)  ;;  %v3907_v23 = vld [vmem:[%s7018_s1 + $0x1a0] sm:$0xff] (!%p363_p2) }
   0xa   : > { %5043 = vmatpush3.bf16.msra.mxu1 (!%p363_p2), %v5042_v8  ;;  %v417_v20 = vld [vmem:[%s7018_s1 + $0x10] sm:$0xff] (!%p363_p2)  ;;  %v5046_v21 = vpack.c.bf16 (!%p363_p2), %v3890_v19, %v3889_v18  ;;  %v418_v22 = vld [vmem:[%s7018_s1 + $0x18] sm:$0xff] (!%p363_p2)  ;;  %v3908_v24 = vld [vmem:[%s7018_s1 + $0x1a8] sm:$0xff] (!%p363_p2) }
   0xb   : > { %5011 = vmatpush3.bf16.msra.mxu0 (!%p363_p2), %v5010_v12  ;;  %5045 = vmatprep.subr.bf16.mxu1 (!%p363_p2), %v5044_v16  ;;  %v5014_v25 = vpack.c.bf16 (!%p363_p2), %v418_v22, %v417_v20  ;;  %v5048_v26 = vpack.c.bf16 (!%p363_p2), %v3908_v24, %v3907_v23  ;;  %v435_v27 = vld [vmem:[%s7018_s1 + $0xa0] sm:$0xff] (!%p363_p2)  ;;  %v436_v28 = vld [vmem:[%s7018_s1 + $0xa8] sm:$0xff] (!%p363_p2)  ;;  %v3909_v35 = vld [vmem:[%s7018_s1 + $0x1b0] sm:$0xff] (!%p363_p2) }
   0xc   : > { %5013 = vmatprep.subr.bf16.mxu0 (!%p363_p2), %v5012_v17  ;;  %v3891_v29 = vld [vmem:[%s7018_s1 + $0x120] sm:$0xff] (!%p363_p2)  ;;  %v5016_v30 = vpack.c.bf16 (!%p363_p2), %v436_v28, %v435_v27  ;;  %v3892_v31 = vld [vmem:[%s7018_s1 + $0x128] sm:$0xff] (!%p363_p2)  ;;  %v3910_v36 = vld [vmem:[%s7018_s1 + $0x1b8] sm:$0xff] (!%p363_p2) }
   0xd   : > { %v419_v32 = vld [vmem:[%s7018_s1 + $0x20] sm:$0xff]  ;;  %v420_v33 = vld [vmem:[%s7018_s1 + $0x28] sm:$0xff]  ;;  %v5050_v34 = vpack.c.bf16 %v3892_v31, %v3891_v29  ;;  %v437_v37 = vld [vmem:[%s7018_s1 + $0xb0] sm:$0xff]  ;;  %v5052_v39 = vpack.c.bf16 %v3910_v36, %v3909_v35  ;;  %s7032_s22 = smov (!%p5623_p3, %s3879_s22), 1 }
   0xe   : > { %5047 = vmatpush3.bf16.msra.mxu1 %v5046_v21  ;;  %v5018_v38 = vpack.c.bf16 %v420_v33, %v419_v32  ;;  %v438_v40 = vld [vmem:[%s7018_s1 + $0xb8] sm:$0xff]  ;;  %v3893_v41 = vld [vmem:[%s7018_s1 + $0x130] sm:$0xff]  ;;  %v3911_v46 = vld [vmem:[%s7018_s1 + $0x1c0] sm:$0xff]  ;;  %s4287_s15 = sshll.u32 %s7032_s22, 3 }
   0xf   : > { %5015 = vmatpush3.bf16.msra.mxu0 %v5014_v25  ;;  %5049 = vmatprep.subr.bf16.mxu1 %v5048_v26  ;;  %v3894_v42 = vld [vmem:[%s7018_s1 + $0x138] sm:$0xff]  ;;  %v5020_v43 = vpack.c.bf16 %v438_v40, %v437_v37  ;;  %v421_v44 = vld [vmem:[%s7018_s1 + $0x30] sm:$0xff]  ;;  %v3912_v47 = vld [vmem:[%s7018_s1 + $0x1c8] sm:$0xff]  ;;  %s5715_s14 = scalar_lea.vmem %s7017_s0, %s4287_s15 }
  0x10   : > { %5017 = vmatprep.subr.bf16.mxu0 %v5016_v30  ;;  %v422_v45 = vld [vmem:[%s7018_s1 + $0x38] sm:$0xff]  ;;  %v439_v48 = vld [vmem:[%s7018_s1 + $0xc0] sm:$0xff]  ;;  %v440_v49 = vld [vmem:[%s7018_s1 + $0xc8] sm:$0xff]  ;;  %v5054_v50 = vpack.c.bf16 %v3894_v42, %v3893_v41  ;;  %v5056_v52 = vpack.c.bf16 %v3912_v47, %v3911_v46 }
  0x11   : > { %v5022_v51 = vpack.c.bf16 %v422_v45, %v421_v44  ;;  %v3895_v53 = vld [vmem:[%s7018_s1 + $0x140] sm:$0xff]  ;;  %v3896_v54 = vld [vmem:[%s7018_s1 + $0x148] sm:$0xff]  ;;  %v5024_v56 = vpack.c.bf16 %v440_v49, %v439_v48  ;;  %v3913_v58 = vld [vmem:[%s7018_s1 + $0x1d0] sm:$0xff] }
  0x12   : > { %5051 = vmatpush3.bf16.msra.mxu1 %v5050_v34  ;;  %v423_v55 = vld [vmem:[%s7018_s1 + $0x40] sm:$0xff]  ;;  %v424_v57 = vld [vmem:[%s7018_s1 + $0x48] sm:$0xff]  ;;  %v3914_v59 = vld [vmem:[%s7018_s1 + $0x1d8] sm:$0xff]  ;;  %v5058_v62 = vpack.c.bf16 %v3896_v54, %v3895_v53  ;;  %v5472_v34 = vmov 0.0  }
  0x13   : > { %5019 = vmatpush3.bf16.msra.mxu0 %v5018_v38  ;;  %5053 = vmatprep.subr.bf16.mxu1 %v5052_v39  ;;  %v441_v60 = vld [vmem:[%s7018_s1 + $0xd0] sm:$0xff]  ;;  %v442_v61 = vld [vmem:[%s7018_s1 + $0xd8] sm:$0xff]  ;;  %v5026_v63 = vpack.c.bf16 %v424_v57, %v423_v55  ;;  %v5060_v0 = vpack.c.bf16 %v3914_v59, %v3913_v58  ;;  %v3915_v6 = vld [vmem:[%s7018_s1 + $0x1e0] sm:$0xff] }
  0x14   : > { %5021 = vmatprep.subr.bf16.mxu0 %v5020_v43  ;;  %v3897_v1 = vld [vmem:[%s7018_s1 + $0x150] sm:$0xff]  ;;  %v3898_v2 = vld [vmem:[%s7018_s1 + $0x158] sm:$0xff]  ;;  %v5028_v4 = vpack.c.bf16 %v442_v61, %v441_v60  ;;  %v3916_v7 = vld [vmem:[%s7018_s1 + $0x1e8] sm:$0xff] }
  0x15   : > { %v425_v3 = vld [vmem:[%s7018_s1 + $0x50] sm:$0xff]  ;;  %v426_v5 = vld [vmem:[%s7018_s1 + $0x58] sm:$0xff]  ;;  %v443_v8 = vld [vmem:[%s7018_s1 + $0xe0] sm:$0xff]  ;;  %v5062_v10 = vpack.c.bf16 %v3898_v2, %v3897_v1  ;;  %v5064_v13 = vpack.c.bf16 %v3916_v7, %v3915_v6 }
  0x16   : > { %5055 = vmatpush3.bf16.msra.mxu1 %v5054_v50  ;;  %v444_v9 = vld [vmem:[%s7018_s1 + $0xe8] sm:$0xff]  ;;  %v3899_v11 = vld [vmem:[%s7018_s1 + $0x160] sm:$0xff]  ;;  %v5030_v12 = vpack.c.bf16 %v426_v5, %v425_v3  ;;  %v3917_v19 = vld [vmem:[%s7018_s1 + $0x1f0] sm:$0xff] }
  0x17   : > { %5023 = vmatpush3.bf16.msra.mxu0 %v5022_v51  ;;  %5057 = vmatprep.subr.bf16.mxu1 %v5056_v52  ;;  %v3900_v14 = vld [vmem:[%s7018_s1 + $0x168] sm:$0xff]  ;;  %v427_v15 = vld [vmem:[%s7018_s1 + $0x60] sm:$0xff]  ;;  %v5032_v17 = vpack.c.bf16 %v444_v9, %v443_v8  ;;  %v3918_v20 = vld [vmem:[%s7018_s1 + $0x1f8] sm:$0xff] }
  0x18   : > { %5025 = vmatprep.subr.bf16.mxu0 %v5024_v56  ;;  %v5733_v16 = vld [vmem:[%s5715_s14] sm:$0x77]  ;;  %v428_v18 = vld [vmem:[%s7018_s1 + $0x68] sm:$0xff]  ;;  %v445_v22 = vld [vmem:[%s7018_s1 + $0xf0] sm:$0xff]  ;;  %v5066_v24 = vpack.c.bf16 %v3900_v14, %v3899_v11  ;;  %v5068_v26 = vpack.c.bf16 %v3918_v20, %v3917_v19 }
  0x19   : > { %v5746_v21 = vcombine.high %v5733_v16, %v5733_v16  ;;  %v446_v23 = vld [vmem:[%s7018_s1 + $0xf8] sm:$0xff]  ;;  %v5034_v25 = vpack.c.bf16 %v428_v18, %v427_v15  ;;  %v3901_v27 = vld [vmem:[%s7018_s1 + $0x170] sm:$0xff]  ;;  %v3940_v35 = vld [vmem:[%s7018_s1 + $0x280] sm:$0xff] }
  0x1a   : > { %5059 = vmatpush3.bf16.msra.mxu1 %v5058_v62  ;;  %v3902_v28 = vld [vmem:[%s7018_s1 + $0x178] sm:$0xff]  ;;  %v5036_v29 = vpack.c.bf16 %v446_v23, %v445_v22  ;;  %v429_v30 = vld [vmem:[%s7018_s1 + $0x70] sm:$0xff]  ;;  %v3941_v36 = vld [vmem:[%s7018_s1 + $0x288] sm:$0xff] }
  0x1b   : > { %5027 = vmatpush3.bf16.msra.mxu0 %v5026_v63  ;;  %5061 = vmatprep.subr.bf16.mxu1 %v5060_v0  ;;  %v430_v31 = vld [vmem:[%s7018_s1 + $0x78] sm:$0xff]  ;;  %v5070_v32 = vpack.c.bf16 %v3902_v28, %v3901_v27  ;;  %v3924_v38 = vld [vmem:[%s7018_s1 + $0x200] sm:$0xff]  ;;  %v3925_v39 = vld [vmem:[%s7018_s1 + $0x208] sm:$0xff]  ;;  %v5072_v47 = vpack.c.bf16 %v3941_v36, %v3940_v35 }
  0x1c   : > { %5029 = vmatprep.subr.bf16.mxu0 %v5028_v4  ;;  %618 = vmatprep.mubr.f32.mxu1 %v5746_v21  ;;  %v5038_v33 = vpack.c.bf16 %v430_v31, %v429_v30  ;;  %v3942_v42 = vld [vmem:[%s7018_s1 + $0x290] sm:$0xff]  ;;  %v3943_v43 = vld [vmem:[%s7018_s1 + $0x298] sm:$0xff]  ;;  %v3919_v46 = vld [vmem:[%s7019_s2 + $0x8] sm:$0xff]  ;;  %v5074_v50 = vpack.c.bf16 %v3925_v39, %v3924_v38 }
  0x1d   : > { %514 = vmatprep.mubr.f32.mxu0 %v5746_v21  ;;  %v520_v49 = vld [vmem:[%s7019_s2] sm:$0xff]  ;;  %v5076_v51 = vpack.c.bf16 %v3943_v43, %v3942_v42  ;;  %v3926_v52 = vld [vmem:[%s7018_s1 + $0x210] sm:$0xff]  ;;  %v3927_v53 = vld [vmem:[%s7018_s1 + $0x218] sm:$0xff] }
  0x1e   : > { %5063 = vmatpush3.bf16.msra.mxu1 %v5062_v10  ;;  %v3944_v54 = vld [vmem:[%s7018_s1 + $0x2a0] sm:$0xff]  ;;  %v3945_v55 = vld [vmem:[%s7018_s1 + $0x2a8] sm:$0xff]  ;;  %v5078_v56 = vpack.c.bf16 %v3927_v53, %v3926_v52  ;;  %v3946_v60 = vld [vmem:[%s7018_s1 + $0x2b0] sm:$0xff] }
  0x1f   : > { %5031 = vmatpush3.bf16.msra.mxu0 %v5030_v12  ;;  %5065 = vmatprep.subr.bf16.mxu1 %v5064_v13  ;;  %v5080_v57 = vpack.c.bf16 %v3945_v55, %v3944_v54  ;;  %v3928_v58 = vld [vmem:[%s7018_s1 + $0x220] sm:$0xff]  ;;  %v3929_v59 = vld [vmem:[%s7018_s1 + $0x228] sm:$0xff]  ;;  %v3947_v61 = vld [vmem:[%s7018_s1 + $0x2b8] sm:$0xff] }
  0x20   : > { %5033 = vmatprep.subr.bf16.mxu0 %v5032_v17  ;;  %v5082_v62 = vpack.c.bf16 %v3929_v59, %v3928_v58  ;;  %v5084_v63 = vpack.c.bf16 %v3947_v61, %v3946_v60  ;;  %v3930_v0 = vld [vmem:[%s7018_s1 + $0x230] sm:$0xff]  ;;  %v3931_v1 = vld [vmem:[%s7018_s1 + $0x238] sm:$0xff]  ;;  %v3948_v2 = vld [vmem:[%s7018_s1 + $0x2c0] sm:$0xff] }
  0x21   : > { %v3949_v3 = vld [vmem:[%s7018_s1 + $0x2c8] sm:$0xff]  ;;  %v5086_v4 = vpack.c.bf16 %v3931_v1, %v3930_v0  ;;  %v3932_v6 = vld [vmem:[%s7018_s1 + $0x240] sm:$0xff]  ;;  %v3950_v8 = vld [vmem:[%s7018_s1 + $0x2d0] sm:$0xff] }
  0x22   : > { %5067 = vmatpush3.bf16.msra.mxu1 %v5066_v24  ;;  %v5088_v5 = vpack.c.bf16 %v3949_v3, %v3948_v2  ;;  %v3933_v7 = vld [vmem:[%s7018_s1 + $0x248] sm:$0xff]  ;;  %v3951_v9 = vld [vmem:[%s7018_s1 + $0x2d8] sm:$0xff]  ;;  %v3934_v12 = vld [vmem:[%s7018_s1 + $0x250] sm:$0xff] }
  0x23   : > { %5035 = vmatpush3.bf16.msra.mxu0 %v5034_v25  ;;  %5069 = vmatprep.subr.bf16.mxu1 %v5068_v26  ;;  %v5090_v10 = vpack.c.bf16 %v3933_v7, %v3932_v6  ;;  %v5092_v11 = vpack.c.bf16 %v3951_v9, %v3950_v8  ;;  %v3935_v13 = vld [vmem:[%s7018_s1 + $0x258] sm:$0xff]  ;;  %v3952_v14 = vld [vmem:[%s7018_s1 + $0x2e0] sm:$0xff]  ;;  %v3953_v15 = vld [vmem:[%s7018_s1 + $0x2e8] sm:$0xff] }
  0x24   : > { %5037 = vmatprep.subr.bf16.mxu0 %v5036_v29  ;;  %v5094_v17 = vpack.c.bf16 %v3935_v13, %v3934_v12  ;;  %v5096_v18 = vpack.c.bf16 %v3953_v15, %v3952_v14  ;;  %v3936_v19 = vld [vmem:[%s7018_s1 + $0x260] sm:$0xff]  ;;  %v3937_v20 = vld [vmem:[%s7018_s1 + $0x268] sm:$0xff]  ;;  %v3954_v22 = vld [vmem:[%s7018_s1 + $0x2f0] sm:$0xff] }
  0x25   : > { %v3955_v23 = vld [vmem:[%s7018_s1 + $0x2f8] sm:$0xff]  ;;  %v5098_v24 = vpack.c.bf16 %v3937_v20, %v3936_v19  ;;  %v3938_v26 = vld [vmem:[%s7018_s1 + $0x270] sm:$0xff]  ;;  %v3975_v35 = vld [vmem:[%s7018_s1 + $0x380] sm:$0xff] }
  0x26   : > { %5071 = vmatpush3.bf16.msra.mxu1 %v5070_v32  ;;  %v5100_v25 = vpack.c.bf16 %v3955_v23, %v3954_v22  ;;  %v3939_v27 = vld [vmem:[%s7018_s1 + $0x278] sm:$0xff]  ;;  %v3976_v36 = vld [vmem:[%s7018_s1 + $0x388] sm:$0xff]  ;;  %v3963_v54 = vld [vmem:[%s7018_s1 + $0x320] sm:$0xff] }
  0x27   : > { %5039 = vmatpush3.bf16.msra.mxu0 %v5038_v33  ;;  %4739 = vmatprep.subr.mxu1 %v5472_v34  ;;  %v5102_v28 = vpack.c.bf16 %v3939_v27, %v3938_v26  ;;  %v3960_v38 = vld [vmem:[%s7018_s1 + $0x308] sm:$0xff]  ;;  %v5104_v43 = vpack.c.bf16 %v3976_v36, %v3975_v35  ;;  %v3965_v60 = vld [vmem:[%s7018_s1 + $0x330] sm:$0xff]  ;;  %v3966_v61 = vld [vmem:[%s7018_s1 + $0x338] sm:$0xff] }
  0x28   : > { %4734 = vmatprep.subr.mxu0 %v5472_v34  ;;  %v3964_v55 = vld [vmem:[%s7018_s1 + $0x328] sm:$0xff]  ;;  %v5118_v0 = vpack.c.bf16 %v3966_v61, %v3965_v60  ;;  %v3967_v2 = vld [vmem:[%s7018_s1 + $0x340] sm:$0xff]  ;;  %v3969_v8 = vld [vmem:[%s7018_s1 + $0x350] sm:$0xff] }
  0x29   : > { %619 = vmatmul.mubr.f32.vlgmr.msra.gmra.mrb[0].mxu1 %v5733_v16  ;;  %v5114_v58 = vpack.c.bf16 %v3964_v55, %v3963_v54  ;;  %v3968_v3 = vld [vmem:[%s7018_s1 + $0x348] sm:$0xff]  ;;  %v3970_v9 = vld [vmem:[%s7018_s1 + $0x358] sm:$0xff]  ;;  %v3971_v14 = vld [vmem:[%s7018_s1 + $0x360] sm:$0xff] }
  0x2a   : > { %515 = vmatmul.mubr.f32.vlgmr.msra.gmra.mrb[0].mxu0 %v5733_v16  ;;  %4741 = vmatprep.mubr.msk.f32.mxu1 %vm5473_vm0, %v5472_v34  ;;  %v5122_v6 = vpack.c.bf16 %v3968_v3, %v3967_v2  ;;  %v5126_v12 = vpack.c.bf16 %v3970_v9, %v3969_v8  ;;  %v3972_v15 = vld [vmem:[%s7018_s1 + $0x368] sm:$0xff]  ;;  %v3973_v22 = vld [vmem:[%s7018_s1 + $0x370] sm:$0xff]  ;;  %v3974_v23 = vld [vmem:[%s7018_s1 + $0x378] sm:$0xff] }
  0x2b   : > { %4736 = vmatprep.mubr.msk.f32.mxu0 %vm5473_vm0, %v5472_v34  ;;  %v5130_v19 = vpack.c.bf16 %v3972_v15, %v3971_v14  ;;  %v4013_v35 = vld [vmem:[%s7018_s1 + $0x498] sm:$0xff]  ;;  %v4000_v54 = vld [vmem:[%s7018_s1 + $0x430] sm:$0xff]  ;;  %v4002_v60 = vld [vmem:[%s7018_s1 + $0x440] sm:$0xff] }
  0x2c   : > { %v4001_v55 = vld [vmem:[%s7018_s1 + $0x438] sm:$0xff]  ;;  %v4003_v61 = vld [vmem:[%s7018_s1 + $0x448] sm:$0xff]  ;;  %v4004_v2 = vld [vmem:[%s7018_s1 + $0x450] sm:$0xff] }
  0x2d   : > { %v4005_v3 = vld [vmem:[%s7018_s1 + $0x458] sm:$0xff]  ;;  %v4006_v8 = vld [vmem:[%s7018_s1 + $0x460] sm:$0xff]  ;;  %v4007_v9 = vld [vmem:[%s7018_s1 + $0x468] sm:$0xff] }
  0x2e   : > { %v4008_v14 = vld [vmem:[%s7018_s1 + $0x470] sm:$0xff]  ;;  %v4009_v15 = vld [vmem:[%s7018_s1 + $0x478] sm:$0xff] }
  0xfc   : > { %v4355_v37 = vpop.f32.mrb[0].mxu1 }
  0xfd   : > { %v4320_v40 = vpop.f32.mrb[0].mxu0  ;;  %v4356_v41 = vpop.f32.mrb[1].mxu1 }
  0xfe   : > { %v4357_v44 = vadd.f32 %v4356_v41, %v4355_v37  ;;  %v4321_v45 = vpop.f32.mrb[1].mxu0  ;;  %v3959_v37 = vld [vmem:[%s7018_s1 + $0x300] sm:$0xff]  ;;  %v3978_v41 = vld [vmem:[%s7018_s1 + $0x398] sm:$0xff] }
  0xff   : > { %v4322_v48 = vadd.f32 %v4321_v45, %v4320_v40  ;;  %v3977_v40 = vld [vmem:[%s7018_s1 + $0x390] sm:$0xff] }
 0x100   : > { %4735 = vmatpush3.msk.msra.mxu0 %vm630_vm1, %v4357_v44  ;;  %v3956_v45 = vld [vmem:[%s7019_s2 + $0x10] sm:$0xff] }
 0x101   : > { %4737 = vmatmul.mubr.msk.f32.vlgmr.msra.gmra.mrb[2].mxu0 %vm626_vm2, %v3919_v46  ;;  %4740 = vmatpush3.msk.msra.mxu1 %vm630_vm1, %v4322_v48  ;;  %v5106_v46 = vpack.c.bf16 %v3960_v38, %v3959_v37  ;;  %v3961_v48 = vld [vmem:[%s7018_s1 + $0x310] sm:$0xff] }
 0x102   : > { %5073 = vmatprep.subr.bf16.mxu0 %v5072_v47  ;;  %4742 = vmatmul.mubr.msk.f32.vlgmr.msra.gmra.mrb[2].mxu1 %vm626_vm2, %v520_v49  ;;  %v5108_v47 = vpack.c.bf16 %v3978_v41, %v3977_v40  ;;  %v3962_v49 = vld [vmem:[%s7018_s1 + $0x318] sm:$0xff] }
 0x103   : > { %5075 = vmatpush3.bf16.msra.mxu0 %v5074_v50  ;;  %877 = vmatprep.mubr.f32.mxu0 %v5746_v21  ;;  %v3979_v50 = vld [vmem:[%s7018_s1 + $0x3a0] sm:$0xff]  ;;  %v5110_v52 = vpack.c.bf16 %v3962_v49, %v3961_v48  ;;  %v3999_v49 = vld [vmem:[%s7018_s1 + $0x428] sm:$0xff] }
 0x104   : > { %5077 = vmatprep.subr.bf16.mxu0 %v5076_v51  ;;  %4744 = vmatprep.subr.mxu1 %v5472_v34  ;;  %v3980_v51 = vld [vmem:[%s7018_s1 + $0x3a8] sm:$0xff]  ;;  %v3998_v48 = vld [vmem:[%s7018_s1 + $0x420] sm:$0xff] }
 0x105   : > { %4746 = vmatprep.mubr.msk.f32.mxu1 %vm5473_vm0, %v5472_v34  ;;  %v5112_v53 = vpack.c.bf16 %v3980_v51, %v3979_v50  ;;  %v4016_v50 = vld [vmem:[%s7018_s1 + $0x4b0] sm:$0xff]  ;;  %v4017_v51 = vld [vmem:[%s7018_s1 + $0x4b8] sm:$0xff] }
 0x107   : > { %5079 = vmatpush3.bf16.msra.mxu0 %v5078_v56  ;;  %v3981_v56 = vld [vmem:[%s7018_s1 + $0x3b0] sm:$0xff] }
 0x108   : > { %5081 = vmatprep.subr.bf16.mxu0 %v5080_v57  ;;  %v3982_v57 = vld [vmem:[%s7018_s1 + $0x3b8] sm:$0xff] }
 0x109   : > { %v5116_v59 = vpack.c.bf16 %v3982_v57, %v3981_v56  ;;  %v4018_v56 = vld [vmem:[%s7018_s1 + $0x4c0] sm:$0xff]  ;;  %v4019_v57 = vld [vmem:[%s7018_s1 + $0x4c8] sm:$0xff] }
 0x10b   : > { %5083 = vmatpush3.bf16.msra.mxu0 %v5082_v62  ;;  %v3983_v62 = vld [vmem:[%s7018_s1 + $0x3c0] sm:$0xff] }
 0x10c   : > { %5085 = vmatprep.subr.bf16.mxu0 %v5084_v63  ;;  %v3984_v63 = vld [vmem:[%s7018_s1 + $0x3c8] sm:$0xff] }
 0x10d   : > { %v5120_v1 = vpack.c.bf16 %v3984_v63, %v3983_v62  ;;  %v4020_v62 = vld [vmem:[%s7018_s1 + $0x4d0] sm:$0xff]  ;;  %v4021_v63 = vld [vmem:[%s7018_s1 + $0x4d8] sm:$0xff] }
 0x10f   : > { %5087 = vmatpush3.bf16.msra.mxu0 %v5086_v4  ;;  %v3985_v4 = vld [vmem:[%s7018_s1 + $0x3d0] sm:$0xff] }
 0x110   : > { %5089 = vmatprep.subr.bf16.mxu0 %v5088_v5  ;;  %v3986_v5 = vld [vmem:[%s7018_s1 + $0x3d8] sm:$0xff] }
 0x111   : > { %v5124_v7 = vpack.c.bf16 %v3986_v5, %v3985_v4  ;;  %v4022_v4 = vld [vmem:[%s7018_s1 + $0x4e0] sm:$0xff]  ;;  %v4023_v5 = vld [vmem:[%s7018_s1 + $0x4e8] sm:$0xff] }
 0x113   : > { %5091 = vmatpush3.bf16.msra.mxu0 %v5090_v10  ;;  %v3987_v10 = vld [vmem:[%s7018_s1 + $0x3e0] sm:$0xff] }
 0x114   : > { %5093 = vmatprep.subr.bf16.mxu0 %v5092_v11  ;;  %v3988_v11 = vld [vmem:[%s7018_s1 + $0x3e8] sm:$0xff] }
 0x115   : > { %v5128_v13 = vpack.c.bf16 %v3988_v11, %v3987_v10  ;;  %v4024_v10 = vld [vmem:[%s7018_s1 + $0x4f0] sm:$0xff]  ;;  %v4025_v11 = vld [vmem:[%s7018_s1 + $0x4f8] sm:$0xff] }
 0x117   : > { %5095 = vmatpush3.bf16.msra.mxu0 %v5094_v17  ;;  %v3989_v17 = vld [vmem:[%s7018_s1 + $0x3f0] sm:$0xff] }
 0x118   : > { %5097 = vmatprep.subr.bf16.mxu0 %v5096_v18  ;;  %v3990_v18 = vld [vmem:[%s7018_s1 + $0x3f8] sm:$0xff] }
 0x119   : > { %v5132_v20 = vpack.c.bf16 %v3990_v18, %v3989_v17  ;;  %v5166_v17 = vpack.c.bf16 %v4009_v15, %v4008_v14  ;;  %v4080_v14 = vld [vmem:[%s7018_s1 + $0x680] sm:$0xff]  ;;  %v4081_v15 = vld [vmem:[%s7018_s1 + $0x688] sm:$0xff] }
 0x11b   : > { %5099 = vmatpush3.bf16.msra.mxu0 %v5098_v24  ;;  %v5134_v24 = vpack.c.bf16 %v3974_v23, %v3973_v22  ;;  %v4045_v22 = vld [vmem:[%s7018_s1 + $0x580] sm:$0xff]  ;;  %v4046_v23 = vld [vmem:[%s7018_s1 + $0x588] sm:$0xff] }
 0x11c   : > { %5101 = vmatprep.subr.bf16.mxu0 %v5100_v25 }
 0x11f   : > { %5103 = vmatpush3.bf16.msra.mxu0 %v5102_v28  ;;  %v4010_v28 = vld [vmem:[%s7018_s1 + $0x480] sm:$0xff] }
 0x120   : > { %4749 = vmatprep.subr.mxu0 %v5472_v34 }
 0x122   : > { %878 = vmatmul.mubr.f32.vlgmr.msra.gmra.mrb[4].mxu0 %v5733_v16 }
 0x123   : > { %4751 = vmatprep.mubr.msk.f32.mxu0 %vm5473_vm0, %v5472_v34 }
 0x1d4   : > { %v700_v29 = vpop.f32.mrb[2].mxu0 }
 0x1d5   : > { %v4738_v30 = vpop.f32.mrb[3].mxu0  ;;  %v776_v31 = vpop.f32.mrb[2].mxu1 }
 0x1d6   : > { %v5890_v32 = vadd.f32 %v776_v31, %v700_v29  ;;  %v4743_v33 = vpop.f32.mrb[3].mxu1  ;;  %v4011_v29 = vld [vmem:[%s7018_s1 + $0x488] sm:$0xff]  ;;  %v3994_v30 = vld [vmem:[%s7018_s1 + $0x400] sm:$0xff] }
 0x1d7   : > { %v3995_v31 = vld [vmem:[%s7018_s1 + $0x408] sm:$0xff]  ;;  %v5136_v37 = vpack.c.bf16 %v4011_v29, %v4010_v28  ;;  %v4048_v28 = vld [vmem:[%s7018_s1 + $0x598] sm:$0xff] }
 0x1d8   : > { %v5138_v40 = vpack.c.bf16 %v3995_v31, %v3994_v30  ;;  %v5168_v30 = vpack.c.bf16 %v4046_v23, %v4045_v22  ;;  %v4083_v22 = vld [vmem:[%s7018_s1 + $0x698] sm:$0xff] }
 0x1f5   : > { %v4394_v39 = vpop.f32.mrb[4].mxu0 }
 0x1f6   : > { %v4395_v42 = vpop.f32.mrb[5].mxu0 }
 0x1f7   : > { %v4396_v44 = vadd.f32 %v4395_v42, %v4394_v39  ;;  %v3991_v39 = vld [vmem:[%s7019_s2 + $0x18] sm:$0xff]  ;;  %v3996_v42 = vld [vmem:[%s7018_s1 + $0x410] sm:$0xff] }
 0x1f9   : > { %4745 = vmatpush3.msk.msra.mxu1 %vm630_vm1, %v4396_v44  ;;  %v4014_v44 = vld [vmem:[%s7018_s1 + $0x4a0] sm:$0xff] }
 0x1fa   : > { %4747 = vmatmul.mubr.msk.f32.vlgmr.msra.gmra.mrb[4].mxu1 %vm626_vm2, %v3956_v45  ;;  %5105 = vmatprep.subr.bf16.mxu1 %v5104_v43  ;;  %v3997_v43 = vld [vmem:[%s7018_s1 + $0x418] sm:$0xff]  ;;  %v4015_v45 = vld [vmem:[%s7018_s1 + $0x4a8] sm:$0xff] }
 0x1fb   : > { %5107 = vmatpush3.bf16.msra.mxu1 %v5106_v46  ;;  %1059 = vmatprep.mubr.f32.mxu1 %v5746_v21  ;;  %v5142_v46 = vpack.c.bf16 %v3997_v43, %v3996_v42  ;;  %v4033_v42 = vld [vmem:[%s7018_s1 + $0x520] sm:$0xff]  ;;  %v4034_v43 = vld [vmem:[%s7018_s1 + $0x528] sm:$0xff] }
 0x1fc   : > { %5109 = vmatprep.subr.bf16.mxu1 %v5108_v47  ;;  %v5144_v47 = vpack.c.bf16 %v4015_v45, %v4014_v44  ;;  %v4051_v44 = vld [vmem:[%s7018_s1 + $0x5b0] sm:$0xff]  ;;  %v4052_v45 = vld [vmem:[%s7018_s1 + $0x5b8] sm:$0xff] }
 0x1ff   : > { %5111 = vmatpush3.bf16.msra.mxu1 %v5110_v52  ;;  %v5146_v52 = vpack.c.bf16 %v3999_v49, %v3998_v48  ;;  %v4035_v48 = vld [vmem:[%s7018_s1 + $0x530] sm:$0xff]  ;;  %v4036_v49 = vld [vmem:[%s7018_s1 + $0x538] sm:$0xff] }
 0x200   : > { %5113 = vmatprep.subr.bf16.mxu1 %v5112_v53  ;;  %v5148_v53 = vpack.c.bf16 %v4017_v51, %v4016_v50  ;;  %v4053_v50 = vld [vmem:[%s7018_s1 + $0x5c0] sm:$0xff]  ;;  %v4054_v51 = vld [vmem:[%s7018_s1 + $0x5c8] sm:$0xff] }
 0x203   : > { %5115 = vmatpush3.bf16.msra.mxu1 %v5114_v58  ;;  %v5150_v58 = vpack.c.bf16 %v4001_v55, %v4000_v54  ;;  %v4037_v54 = vld [vmem:[%s7018_s1 + $0x540] sm:$0xff]  ;;  %v4038_v55 = vld [vmem:[%s7018_s1 + $0x548] sm:$0xff] }
 0x204   : > { %5117 = vmatprep.subr.bf16.mxu1 %v5116_v59  ;;  %v5152_v59 = vpack.c.bf16 %v4019_v57, %v4018_v56  ;;  %v4055_v56 = vld [vmem:[%s7018_s1 + $0x5d0] sm:$0xff]  ;;  %v4056_v57 = vld [vmem:[%s7018_s1 + $0x5d8] sm:$0xff] }
 0x207   : > { %5119 = vmatpush3.bf16.msra.mxu1 %v5118_v0  ;;  %v5154_v0 = vpack.c.bf16 %v4003_v61, %v4002_v60  ;;  %v4039_v60 = vld [vmem:[%s7018_s1 + $0x550] sm:$0xff]  ;;  %v4040_v61 = vld [vmem:[%s7018_s1 + $0x558] sm:$0xff] }
 0x208   : > { %5121 = vmatprep.subr.bf16.mxu1 %v5120_v1  ;;  %v5156_v1 = vpack.c.bf16 %v4021_v63, %v4020_v62  ;;  %v4057_v62 = vld [vmem:[%s7018_s1 + $0x5e0] sm:$0xff]  ;;  %v4058_v63 = vld [vmem:[%s7018_s1 + $0x5e8] sm:$0xff] }
 0x20b   : > { %5123 = vmatpush3.bf16.msra.mxu1 %v5122_v6  ;;  %v5158_v6 = vpack.c.bf16 %v4005_v3, %v4004_v2  ;;  %v4041_v2 = vld [vmem:[%s7018_s1 + $0x560] sm:$0xff]  ;;  %v4042_v3 = vld [vmem:[%s7018_s1 + $0x568] sm:$0xff] }
 0x20c   : > { %5125 = vmatprep.subr.bf16.mxu1 %v5124_v7  ;;  %v5160_v7 = vpack.c.bf16 %v4023_v5, %v4022_v4  ;;  %v4059_v4 = vld [vmem:[%s7018_s1 + $0x5f0] sm:$0xff]  ;;  %v4060_v5 = vld [vmem:[%s7018_s1 + $0x5f8] sm:$0xff] }
 0x20f   : > { %5127 = vmatpush3.bf16.msra.mxu1 %v5126_v12  ;;  %v5162_v12 = vpack.c.bf16 %v4007_v9, %v4006_v8  ;;  %v4043_v8 = vld [vmem:[%s7018_s1 + $0x570] sm:$0xff]  ;;  %v4044_v9 = vld [vmem:[%s7018_s1 + $0x578] sm:$0xff] }
 0x210   : > { %5129 = vmatprep.subr.bf16.mxu1 %v5128_v13  ;;  %v5164_v13 = vpack.c.bf16 %v4025_v11, %v4024_v10  ;;  %v5198_v10 = vpack.c.bf16 %v4044_v9, %v4043_v8  ;;  %v4115_v8 = vld [vmem:[%s7018_s1 + $0x780] sm:$0xff]  ;;  %v4116_v9 = vld [vmem:[%s7018_s1 + $0x788] sm:$0xff] }
 0x213   : > { %5131 = vmatpush3.bf16.msra.mxu1 %v5130_v19 }
 0x214   : > { %5133 = vmatprep.subr.bf16.mxu1 %v5132_v20 }
 0x217   : > { %5135 = vmatpush3.bf16.msra.mxu1 %v5134_v24  ;;  %v4029_v24 = vld [vmem:[%s7018_s1 + $0x500] sm:$0xff] }
 0x218   : > { %4754 = vmatprep.subr.mxu1 %v5472_v34 }
 0x21a   : > { %1060 = vmatmul.mubr.f32.vlgmr.msra.gmra.mrb[6].mxu1 %v5733_v16 }
 0x21b   : > { %4756 = vmatprep.mubr.msk.f32.mxu1 %vm5473_vm0, %v5472_v34 }
 0x2cd   : > { %v957_v25 = vpop.f32.mrb[4].mxu1 }
 0x2ce   : > { %v5999_v26 = vadd.f32 %v957_v25, %v5890_v32  ;;  %v4748_v27 = vpop.f32.mrb[5].mxu1  ;;  %v4012_v32 = vld [vmem:[%s7018_s1 + $0x490] sm:$0xff]  ;;  %v4030_v25 = vld [vmem:[%s7018_s1 + $0x508] sm:$0xff] }
 0x2cf   : > { %v5140_v41 = vpack.c.bf16 %v4013_v35, %v4012_v32  ;;  %v5170_v32 = vpack.c.bf16 %v4030_v25, %v4029_v24  ;;  %v5200_v24 = vpack.c.bf16 %v4081_v15, %v4080_v14  ;;  %v4118_v14 = vld [vmem:[%s7018_s1 + $0x798] sm:$0xff] }
 0x2ed   : > { %v4431_v33 = vpop.f32.mrb[6].mxu1 }
 0x2ee   : > { %v4432_v36 = vpop.f32.mrb[7].mxu1 }
 0x2ef   : > { %v4433_v38 = vadd.f32 %v4432_v36, %v4431_v33  ;;  %v4026_v33 = vld [vmem:[%s7019_s2 + $0x20] sm:$0xff]  ;;  %v4031_v36 = vld [vmem:[%s7018_s1 + $0x510] sm:$0xff] }
 0x2f1   : > { %4750 = vmatpush3.msk.msra.mxu0 %vm630_vm1, %v4433_v38  ;;  %v4049_v38 = vld [vmem:[%s7018_s1 + $0x5a0] sm:$0xff] }
 0x2f2   : > { %4752 = vmatmul.mubr.msk.f32.vlgmr.msra.gmra.mrb[6].mxu0 %vm626_vm2, %v3991_v39  ;;  %5137 = vmatprep.subr.bf16.mxu0 %v5136_v37  ;;  %v4032_v37 = vld [vmem:[%s7018_s1 + $0x518] sm:$0xff]  ;;  %v4050_v39 = vld [vmem:[%s7018_s1 + $0x5a8] sm:$0xff] }
 0x2f3   : > { %5139 = vmatpush3.bf16.msra.mxu0 %v5138_v40  ;;  %1241 = vmatprep.mubr.f32.mxu0 %v5746_v21  ;;  %v5174_v40 = vpack.c.bf16 %v4032_v37, %v4031_v36  ;;  %v4068_v36 = vld [vmem:[%s7018_s1 + $0x620] sm:$0xff]  ;;  %v4069_v37 = vld [vmem:[%s7018_s1 + $0x628] sm:$0xff] }
 0x2f4   : > { %5141 = vmatprep.subr.bf16.mxu0 %v5140_v41  ;;  %v5176_v41 = vpack.c.bf16 %v4050_v39, %v4049_v38  ;;  %v4086_v38 = vld [vmem:[%s7018_s1 + $0x6b0] sm:$0xff]  ;;  %v4087_v39 = vld [vmem:[%s7018_s1 + $0x6b8] sm:$0xff] }
 0x2f7   : > { %5143 = vmatpush3.bf16.msra.mxu0 %v5142_v46  ;;  %v5178_v46 = vpack.c.bf16 %v4034_v43, %v4033_v42  ;;  %v4070_v42 = vld [vmem:[%s7018_s1 + $0x630] sm:$0xff]  ;;  %v4071_v43 = vld [vmem:[%s7018_s1 + $0x638] sm:$0xff] }
 0x2f8   : > { %5145 = vmatprep.subr.bf16.mxu0 %v5144_v47  ;;  %v5180_v47 = vpack.c.bf16 %v4052_v45, %v4051_v44  ;;  %v4088_v44 = vld [vmem:[%s7018_s1 + $0x6c0] sm:$0xff]  ;;  %v4089_v45 = vld [vmem:[%s7018_s1 + $0x6c8] sm:$0xff] }
 0x2fb   : > { %5147 = vmatpush3.bf16.msra.mxu0 %v5146_v52  ;;  %v5182_v52 = vpack.c.bf16 %v4036_v49, %v4035_v48  ;;  %v4072_v48 = vld [vmem:[%s7018_s1 + $0x640] sm:$0xff]  ;;  %v4073_v49 = vld [vmem:[%s7018_s1 + $0x648] sm:$0xff] }
 0x2fc   : > { %5149 = vmatprep.subr.bf16.mxu0 %v5148_v53  ;;  %v5184_v53 = vpack.c.bf16 %v4054_v51, %v4053_v50  ;;  %v4090_v50 = vld [vmem:[%s7018_s1 + $0x6d0] sm:$0xff]  ;;  %v4091_v51 = vld [vmem:[%s7018_s1 + $0x6d8] sm:$0xff] }
 0x2ff   : > { %5151 = vmatpush3.bf16.msra.mxu0 %v5150_v58  ;;  %v5186_v58 = vpack.c.bf16 %v4038_v55, %v4037_v54  ;;  %v4074_v54 = vld [vmem:[%s7018_s1 + $0x650] sm:$0xff]  ;;  %v4075_v55 = vld [vmem:[%s7018_s1 + $0x658] sm:$0xff] }
 0x300   : > { %5153 = vmatprep.subr.bf16.mxu0 %v5152_v59  ;;  %v5188_v59 = vpack.c.bf16 %v4056_v57, %v4055_v56  ;;  %v4092_v56 = vld [vmem:[%s7018_s1 + $0x6e0] sm:$0xff]  ;;  %v4093_v57 = vld [vmem:[%s7018_s1 + $0x6e8] sm:$0xff] }
 0x303   : > { %5155 = vmatpush3.bf16.msra.mxu0 %v5154_v0  ;;  %v5190_v0 = vpack.c.bf16 %v4040_v61, %v4039_v60  ;;  %v4076_v60 = vld [vmem:[%s7018_s1 + $0x660] sm:$0xff]  ;;  %v4077_v61 = vld [vmem:[%s7018_s1 + $0x668] sm:$0xff] }
 0x304   : > { %5157 = vmatprep.subr.bf16.mxu0 %v5156_v1  ;;  %v5192_v1 = vpack.c.bf16 %v4058_v63, %v4057_v62  ;;  %v4094_v62 = vld [vmem:[%s7018_s1 + $0x6f0] sm:$0xff]  ;;  %v4095_v63 = vld [vmem:[%s7018_s1 + $0x6f8] sm:$0xff] }
 0x307   : > { %5159 = vmatpush3.bf16.msra.mxu0 %v5158_v6  ;;  %v5194_v6 = vpack.c.bf16 %v4042_v3, %v4041_v2  ;;  %v4078_v2 = vld [vmem:[%s7018_s1 + $0x670] sm:$0xff]  ;;  %v4079_v3 = vld [vmem:[%s7018_s1 + $0x678] sm:$0xff] }
 0x308   : > { %5161 = vmatprep.subr.bf16.mxu0 %v5160_v7  ;;  %v5196_v7 = vpack.c.bf16 %v4060_v5, %v4059_v4  ;;  %v5230_v4 = vpack.c.bf16 %v4079_v3, %v4078_v2  ;;  %v4150_v2 = vld [vmem:[%s7018_s1 + $0x880] sm:$0xff]  ;;  %v4151_v3 = vld [vmem:[%s7018_s1 + $0x888] sm:$0xff] }
 0x30b   : > { %5163 = vmatpush3.bf16.msra.mxu0 %v5162_v12 }
 0x30c   : > { %5165 = vmatprep.subr.bf16.mxu0 %v5164_v13 }
 0x30f   : > { %5167 = vmatpush3.bf16.msra.mxu0 %v5166_v17  ;;  %v4064_v17 = vld [vmem:[%s7018_s1 + $0x600] sm:$0xff] }
 0x310   : > { %4759 = vmatprep.subr.mxu0 %v5472_v34 }
 0x312   : > { %1242 = vmatmul.mubr.f32.vlgmr.msra.gmra.mrb[8].mxu0 %v5733_v16 }
 0x313   : > { %4761 = vmatprep.mubr.msk.f32.mxu0 %vm5473_vm0, %v5472_v34 }
 0x3c5   : > { %v1139_v18 = vpop.f32.mrb[6].mxu0 }
 0x3c6   : > { %v6108_v19 = vadd.f32 %v1139_v18, %v5999_v26  ;;  %v4753_v20 = vpop.f32.mrb[7].mxu0  ;;  %v4047_v26 = vld [vmem:[%s7018_s1 + $0x590] sm:$0xff]  ;;  %v4065_v18 = vld [vmem:[%s7018_s1 + $0x608] sm:$0xff] }
 0x3c7   : > { %v5172_v35 = vpack.c.bf16 %v4048_v28, %v4047_v26  ;;  %v5202_v26 = vpack.c.bf16 %v4065_v18, %v4064_v17  ;;  %v5232_v17 = vpack.c.bf16 %v4116_v9, %v4115_v8  ;;  %v5264_v9 = vpack.c.bf16 %v4151_v3, %v4150_v2  ;;  %v6572_v2 = vld [vmem:[%s7026_s9 + $0x10] sm:$0x1f] }
 0x3c8   : > { %vm3721_vm5 = vcmp.lt.f32.partialorder %v6572_v2, 1.5  ;;  %vm3718_vm8 = vcmp.lt.f32.partialorder %v6572_v2, 0.5  ;;  %vm3798_vm13 = vcmp.lt.f32.partialorder %v6572_v2, 3.5 }
 0x3e5   : > { %v4468_v27 = vpop.f32.mrb[8].mxu0 }
 0x3e6   : > { %v4469_v29 = vpop.f32.mrb[9].mxu0 }
 0x3e7   : > { %v4470_v31 = vadd.f32 %v4469_v29, %v4468_v27  ;;  %v4061_v27 = vld [vmem:[%s7019_s2 + $0x28] sm:$0xff]  ;;  %v4066_v29 = vld [vmem:[%s7018_s1 + $0x610] sm:$0xff] }
 0x3e9   : > { %4755 = vmatpush3.msk.msra.mxu1 %vm630_vm1, %v4470_v31  ;;  %v4084_v31 = vld [vmem:[%s7018_s1 + $0x6a0] sm:$0xff] }
 0x3ea   : > { %4757 = vmatmul.mubr.msk.f32.vlgmr.msra.gmra.mrb[8].mxu1 %vm626_vm2, %v4026_v33  ;;  %5169 = vmatprep.subr.bf16.mxu1 %v5168_v30  ;;  %v4067_v30 = vld [vmem:[%s7018_s1 + $0x618] sm:$0xff]  ;;  %v4085_v33 = vld [vmem:[%s7018_s1 + $0x6a8] sm:$0xff] }
 0x3eb   : > { %5171 = vmatpush3.bf16.msra.mxu1 %v5170_v32  ;;  %1423 = vmatprep.mubr.f32.mxu1 %v5746_v21  ;;  %v5206_v32 = vpack.c.bf16 %v4067_v30, %v4066_v29  ;;  %v4103_v29 = vld [vmem:[%s7018_s1 + $0x720] sm:$0xff]  ;;  %v4104_v30 = vld [vmem:[%s7018_s1 + $0x728] sm:$0xff] }
 0x3ec   : > { %5173 = vmatprep.subr.bf16.mxu1 %v5172_v35  ;;  %v5208_v35 = vpack.c.bf16 %v4085_v33, %v4084_v31  ;;  %v4121_v31 = vld [vmem:[%s7018_s1 + $0x7b0] sm:$0xff]  ;;  %v4122_v33 = vld [vmem:[%s7018_s1 + $0x7b8] sm:$0xff] }
 0x3ef   : > { %5175 = vmatpush3.bf16.msra.mxu1 %v5174_v40  ;;  %v5210_v40 = vpack.c.bf16 %v4069_v37, %v4068_v36  ;;  %v4105_v36 = vld [vmem:[%s7018_s1 + $0x730] sm:$0xff]  ;;  %v4106_v37 = vld [vmem:[%s7018_s1 + $0x738] sm:$0xff] }
 0x3f0   : > { %5177 = vmatprep.subr.bf16.mxu1 %v5176_v41  ;;  %v5212_v41 = vpack.c.bf16 %v4087_v39, %v4086_v38  ;;  %v4123_v38 = vld [vmem:[%s7018_s1 + $0x7c0] sm:$0xff]  ;;  %v4124_v39 = vld [vmem:[%s7018_s1 + $0x7c8] sm:$0xff] }
 0x3f3   : > { %5179 = vmatpush3.bf16.msra.mxu1 %v5178_v46  ;;  %v5214_v46 = vpack.c.bf16 %v4071_v43, %v4070_v42  ;;  %v4107_v42 = vld [vmem:[%s7018_s1 + $0x740] sm:$0xff]  ;;  %v4108_v43 = vld [vmem:[%s7018_s1 + $0x748] sm:$0xff] }
 0x3f4   : > { %5181 = vmatprep.subr.bf16.mxu1 %v5180_v47  ;;  %v5216_v47 = vpack.c.bf16 %v4089_v45, %v4088_v44  ;;  %v4125_v44 = vld [vmem:[%s7018_s1 + $0x7d0] sm:$0xff]  ;;  %v4126_v45 = vld [vmem:[%s7018_s1 + $0x7d8] sm:$0xff] }
 0x3f7   : > { %5183 = vmatpush3.bf16.msra.mxu1 %v5182_v52  ;;  %v5218_v52 = vpack.c.bf16 %v4073_v49, %v4072_v48  ;;  %v4109_v48 = vld [vmem:[%s7018_s1 + $0x750] sm:$0xff]  ;;  %v4110_v49 = vld [vmem:[%s7018_s1 + $0x758] sm:$0xff] }
 0x3f8   : > { %5185 = vmatprep.subr.bf16.mxu1 %v5184_v53  ;;  %v5220_v53 = vpack.c.bf16 %v4091_v51, %v4090_v50  ;;  %v4127_v50 = vld [vmem:[%s7018_s1 + $0x7e0] sm:$0xff]  ;;  %v4128_v51 = vld [vmem:[%s7018_s1 + $0x7e8] sm:$0xff] }
 0x3fb   : > { %5187 = vmatpush3.bf16.msra.mxu1 %v5186_v58  ;;  %v5222_v58 = vpack.c.bf16 %v4075_v55, %v4074_v54  ;;  %v4111_v54 = vld [vmem:[%s7018_s1 + $0x760] sm:$0xff]  ;;  %v4112_v55 = vld [vmem:[%s7018_s1 + $0x768] sm:$0xff] }
 0x3fc   : > { %5189 = vmatprep.subr.bf16.mxu1 %v5188_v59  ;;  %v5224_v59 = vpack.c.bf16 %v4093_v57, %v4092_v56  ;;  %v4129_v56 = vld [vmem:[%s7018_s1 + $0x7f0] sm:$0xff]  ;;  %v4130_v57 = vld [vmem:[%s7018_s1 + $0x7f8] sm:$0xff] }
 0x3ff   : > { %5191 = vmatpush3.bf16.msra.mxu1 %v5190_v0  ;;  %v5226_v0 = vpack.c.bf16 %v4077_v61, %v4076_v60  ;;  %v4113_v60 = vld [vmem:[%s7018_s1 + $0x770] sm:$0xff]  ;;  %v4114_v61 = vld [vmem:[%s7018_s1 + $0x778] sm:$0xff] }
 0x400   : > { %5193 = vmatprep.subr.bf16.mxu1 %v5192_v1  ;;  %v5228_v1 = vpack.c.bf16 %v4095_v63, %v4094_v62  ;;  %v5262_v62 = vpack.c.bf16 %v4114_v61, %v4113_v60  ;;  %v3583_v60 = vld [vmem:[%s7025_s8] sm:$0xff] }
 0x401   : > { %v6557_v61 = vld [vmem:[%s7026_s9] sm:$0xff] }
 0x402   : > { %vm3719_vm3 = vcmp.lt.f32.partialorder %v6557_v61, 1.5  ;;  %vm3716_vm6 = vcmp.lt.f32.partialorder %v6557_v61, 0.5  ;;  %vm3796_vm12 = vcmp.lt.f32.partialorder %v6557_v61, 3.5 }
 0x403   : > { %5195 = vmatpush3.bf16.msra.mxu1 %v5194_v6 }
 0x404   : > { %5197 = vmatprep.subr.bf16.mxu1 %v5196_v7 }
 0x407   : > { %5199 = vmatpush3.bf16.msra.mxu1 %v5198_v10  ;;  %v4099_v10 = vld [vmem:[%s7018_s1 + $0x700] sm:$0xff] }
 0x408   : > { %4764 = vmatprep.subr.mxu1 %v5472_v34 }
 0x40a   : > { %1424 = vmatmul.mubr.f32.vlgmr.msra.gmra.mrb[10].mxu1 %v5733_v16 }
 0x40b   : > { %4766 = vmatprep.mubr.msk.f32.mxu1 %vm5473_vm0, %v5472_v34 }
 0x4bd   : > { %v1321_v11 = vpop.f32.mrb[8].mxu1 }
 0x4be   : > { %v6217_v12 = vadd.f32 %v1321_v11, %v6108_v19  ;;  %v4758_v13 = vpop.f32.mrb[9].mxu1  ;;  %v4082_v19 = vld [vmem:[%s7018_s1 + $0x690] sm:$0xff]  ;;  %v4100_v11 = vld [vmem:[%s7018_s1 + $0x708] sm:$0xff] }
 0x4bf   : > { %v5204_v28 = vpack.c.bf16 %v4083_v22, %v4082_v19  ;;  %v5234_v19 = vpack.c.bf16 %v4100_v11, %v4099_v10  ;;  %v4131_v11 = vld [vmem:[%s7019_s2 + $0x38] sm:$0xff] }
 0x4dd   : > { %v4505_v20 = vpop.f32.mrb[10].mxu1 }
 0x4de   : > { %v4506_v23 = vpop.f32.mrb[11].mxu1 }
 0x4df   : > { %v4507_v25 = vadd.f32 %v4506_v23, %v4505_v20  ;;  %v4096_v20 = vld [vmem:[%s7019_s2 + $0x30] sm:$0xff] }
 0x4e0   : > { %v4101_v23 = vld [vmem:[%s7018_s1 + $0x710] sm:$0xff] }
 0x4e1   : > { %4760 = vmatpush3.msk.msra.mxu0 %vm630_vm1, %v4507_v25  ;;  %v4119_v25 = vld [vmem:[%s7018_s1 + $0x7a0] sm:$0xff] }
 0x4e2   : > { %4762 = vmatmul.mubr.msk.f32.vlgmr.msra.gmra.mrb[10].mxu0 %vm626_vm2, %v4061_v27  ;;  %5201 = vmatprep.subr.bf16.mxu0 %v5200_v24  ;;  %v4102_v24 = vld [vmem:[%s7018_s1 + $0x718] sm:$0xff]  ;;  %v4120_v27 = vld [vmem:[%s7018_s1 + $0x7a8] sm:$0xff] }
 0x4e3   : > { %5203 = vmatpush3.bf16.msra.mxu0 %v5202_v26  ;;  %1605 = vmatprep.mubr.f32.mxu0 %v5746_v21  ;;  %v5238_v26 = vpack.c.bf16 %v4102_v24, %v4101_v23  ;;  %v4139_v23 = vld [vmem:[%s7018_s1 + $0x828] sm:$0xff]  ;;  %v4156_v24 = vld [vmem:[%s7018_s1 + $0x8b0] sm:$0xff] }
 0x4e4   : > { %5205 = vmatprep.subr.bf16.mxu0 %v5204_v28  ;;  %v5240_v28 = vpack.c.bf16 %v4120_v27, %v4119_v25  ;;  %v4157_v25 = vld [vmem:[%s7018_s1 + $0x8b8] sm:$0xff] }
 0x4e5   : > { %v5276_v27 = vpack.c.bf16 %v4157_v25, %v4156_v24  ;;  %v2071_v24 = vld [vmem:[%s7021_s4 + $0x18] sm:$0xff] }
 0x4e7   : > { %5207 = vmatpush3.bf16.msra.mxu0 %v5206_v32  ;;  %v5242_v32 = vpack.c.bf16 %v4104_v30, %v4103_v29  ;;  %v4158_v29 = vld [vmem:[%s7018_s1 + $0x8c0] sm:$0xff]  ;;  %v4159_v30 = vld [vmem:[%s7018_s1 + $0x8c8] sm:$0xff] }
 0x4e8   : > { %5209 = vmatprep.subr.bf16.mxu0 %v5208_v35  ;;  %v5244_v35 = vpack.c.bf16 %v4122_v33, %v4121_v31  ;;  %v5280_v33 = vpack.c.bf16 %v4159_v30, %v4158_v29  ;;  %v2075_v29 = vld [vmem:[%s7021_s4 + $0x38] sm:$0xff] }
 0x4eb   : > { %5211 = vmatpush3.bf16.msra.mxu0 %v5210_v40  ;;  %v5246_v40 = vpack.c.bf16 %v4106_v37, %v4105_v36  ;;  %v4160_v36 = vld [vmem:[%s7018_s1 + $0x8d0] sm:$0xff]  ;;  %v4161_v37 = vld [vmem:[%s7018_s1 + $0x8d8] sm:$0xff] }
 0x4ec   : > { %5213 = vmatprep.subr.bf16.mxu0 %v5212_v41  ;;  %v5248_v41 = vpack.c.bf16 %v4124_v39, %v4123_v38  ;;  %v5284_v39 = vpack.c.bf16 %v4161_v37, %v4160_v36 }
 0x4ef   : > { %5215 = vmatpush3.bf16.msra.mxu0 %v5214_v46  ;;  %v5250_v46 = vpack.c.bf16 %v4108_v43, %v4107_v42  ;;  %v4162_v42 = vld [vmem:[%s7018_s1 + $0x8e0] sm:$0xff]  ;;  %v4163_v43 = vld [vmem:[%s7018_s1 + $0x8e8] sm:$0xff] }
 0x4f0   : > { %5217 = vmatprep.subr.bf16.mxu0 %v5216_v47  ;;  %v5252_v47 = vpack.c.bf16 %v4126_v45, %v4125_v44  ;;  %v5288_v45 = vpack.c.bf16 %v4163_v43, %v4162_v42 }
 0x4f3   : > { %5219 = vmatpush3.bf16.msra.mxu0 %v5218_v52  ;;  %v5254_v52 = vpack.c.bf16 %v4110_v49, %v4109_v48  ;;  %v4164_v48 = vld [vmem:[%s7018_s1 + $0x8f0] sm:$0xff]  ;;  %v4165_v49 = vld [vmem:[%s7018_s1 + $0x8f8] sm:$0xff] }
 0x4f4   : > { %5221 = vmatprep.subr.bf16.mxu0 %v5220_v53  ;;  %v5256_v53 = vpack.c.bf16 %v4128_v51, %v4127_v50  ;;  %v5292_v51 = vpack.c.bf16 %v4165_v49, %v4164_v48  ;;  %v4175_v48 = vld [vmem:[%s7021_s4 + $0x60] sm:$0xff]  ;;  %v4176_v49 = vld [vmem:[%s7021_s4 + $0x68] sm:$0xff] }
 0x4f7   : > { %5223 = vmatpush3.bf16.msra.mxu0 %v5222_v58  ;;  %v5258_v58 = vpack.c.bf16 %v4112_v55, %v4111_v54  ;;  %v5463_v55 = vld [vmem:[%s5715_s14] sm:$0x77]  ;;  %s5423_s14 = smul.u32 24, %s7032_s22 }
 0x4f8   : > { %5225 = vmatprep.subr.bf16.mxu0 %v5224_v59  ;;  %v5260_v59 = vpack.c.bf16 %v4130_v57, %v4129_v56  ;;  %v2054_v56 = vld [vmem:[%s7020_s3] sm:$0xff]  ;;  %v5474_v57 = vmov 0  }
 0x4f9   : > { %5436 = vset.pattern.permute.xlu0 %v5474_v57  ;;  %5437 = vset.pattern.permute.xlu1 %v5474_v57  ;;  %v3722_v3 = vsel %vm3719_vm3, 1, %v5474_v57  ;;  %s413_s23 = scalar_lea.vmem %s7029_s12, %s5423_s14 }
 0x4fa   : > { %2057 = vperm.xlu0 %5436, %v2054_v56  }
 0x4fb   : > { %5227 = vmatpush3.bf16.msra.mxu0 %v5226_v0 }
 0x4fc   : > { %5229 = vmatprep.subr.bf16.mxu0 %v5228_v1 }
 0x4ff   : > { %5231 = vmatpush3.bf16.msra.mxu0 %v5230_v4  ;;  %v4135_v4 = vld [vmem:[%s7018_s1 + $0x808] sm:$0xff] }
 0x500   : > { %4769 = vmatprep.subr.mxu0 %v5472_v34 }
 0x502   : > { %1606 = vmatmul.mubr.f32.vlgmr.msra.gmra.mrb[12].mxu0 %v5733_v16 }
 0x503   : > { %4771 = vmatprep.mubr.msk.f32.mxu0 %vm5473_vm0, %v5472_v34 }
 0x5b5   : > { %v1503_v5 = vpop.f32.mrb[10].mxu0 }
 0x5b6   : > { %v6326_v6 = vadd.f32 %v1503_v5, %v6217_v12  ;;  %v4763_v7 = vpop.f32.mrb[11].mxu0  ;;  %v4117_v12 = vld [vmem:[%s7018_s1 + $0x790] sm:$0xff] }
 0x5b7   : > { %v5236_v22 = vpack.c.bf16 %v4118_v14, %v4117_v12  ;;  %v4153_v7 = vld [vmem:[%s7018_s1 + $0x898] sm:$0xff]  ;;  %v4136_v14 = vld [vmem:[%s7018_s1 + $0x810] sm:$0xff] }
 0x5d5   : > { %v4542_v13 = vpop.f32.mrb[12].mxu0 }
 0x5d6   : > { %v4543_v15 = vpop.f32.mrb[13].mxu0 }
 0x5d7   : > { %v4544_v18 = vadd.f32 %v4543_v15, %v4542_v13  ;;  %v4137_v15 = vld [vmem:[%s7018_s1 + $0x818] sm:$0xff] }
 0x5d9   : > { %4765 = vmatpush3.msk.msra.mxu1 %vm630_vm1, %v4544_v18  ;;  %v4155_v18 = vld [vmem:[%s7018_s1 + $0x8a8] sm:$0xff] }
 0x5da   : > { %4767 = vmatmul.mubr.msk.f32.vlgmr.msra.gmra.mrb[12].mxu1 %vm626_vm2, %v4096_v20  ;;  %5233 = vmatprep.subr.bf16.mxu1 %v5232_v17  ;;  %v4154_v17 = vld [vmem:[%s7018_s1 + $0x8a0] sm:$0xff]  ;;  %v5270_v20 = vpack.c.bf16 %v4137_v15, %v4136_v14 }
 0x5db   : > { %5235 = vmatpush3.bf16.msra.mxu1 %v5234_v19  ;;  %1787 = vmatprep.mubr.f32.mxu1 %v5746_v21  ;;  %v5272_v19 = vpack.c.bf16 %v4155_v18, %v4154_v17  ;;  %v4166_v18 = vld [vmem:[%s7019_s2 + $0x40] sm:$0xff] }
 0x5dc   : > { %5237 = vmatprep.subr.bf16.mxu1 %v5236_v22  ;;  %v4138_v22 = vld [vmem:[%s7018_s1 + $0x820] sm:$0xff] }
 0x5df   : > { %5239 = vmatpush3.bf16.msra.mxu1 %v5238_v26  ;;  %v4140_v26 = vld [vmem:[%s7018_s1 + $0x830] sm:$0xff] }
 0x5e0   : > { %5241 = vmatprep.subr.bf16.mxu1 %v5240_v28  ;;  %v4141_v28 = vld [vmem:[%s7018_s1 + $0x838] sm:$0xff] }
 0x5e1   : > { %v5278_v31 = vpack.c.bf16 %v4141_v28, %v4140_v26  ;;  %v2074_v28 = vld [vmem:[%s7021_s4 + $0x30] sm:$0xff] }
 0x5e2   : > { %v5306_v30 = vpack.c.bf16 %v2075_v29, %v2074_v28  ;;  %v4245_v28 = vld [vmem:[%s7021_s4 + $0x1b8] sm:$0xff] }
 0x5e3   : > { %5243 = vmatpush3.bf16.msra.mxu1 %v5242_v32  ;;  %v4142_v32 = vld [vmem:[%s7018_s1 + $0x840] sm:$0xff] }
 0x5e4   : > { %5245 = vmatprep.subr.bf16.mxu1 %v5244_v35  ;;  %v4143_v35 = vld [vmem:[%s7018_s1 + $0x848] sm:$0xff] }
 0x5e5   : > { %v5282_v38 = vpack.c.bf16 %v4143_v35, %v4142_v32  ;;  %v2058_v35 = vpop.permute.xlu0 %2057 }
 0x5e7   : > { %5247 = vmatpush3.bf16.msra.mxu1 %v5246_v40  ;;  %v4144_v40 = vld [vmem:[%s7018_s1 + $0x850] sm:$0xff] }
 0x5e8   : > { %5249 = vmatprep.subr.bf16.mxu1 %v5248_v41  ;;  %v4145_v41 = vld [vmem:[%s7018_s1 + $0x858] sm:$0xff] }
 0x5e9   : > { %v5286_v44 = vpack.c.bf16 %v4145_v41, %v4144_v40  ;;  %v4171_v40 = vld [vmem:[%s7021_s4 + $0x40] sm:$0xff]  ;;  %v4172_v41 = vld [vmem:[%s7021_s4 + $0x48] sm:$0xff] }
 0x5ea   : > { %v5309_v43 = vpack.c.bf16 %v4172_v41, %v4171_v40  ;;  %v4257_v40 = vld [vmem:[%s7021_s4 + $0x1f0] sm:$0xff]  ;;  %v4258_v41 = vld [vmem:[%s7021_s4 + $0x1f8] sm:$0xff] }
 0x5eb   : > { %5251 = vmatpush3.bf16.msra.mxu1 %v5250_v46  ;;  %v4146_v46 = vld [vmem:[%s7018_s1 + $0x860] sm:$0xff] }
 0x5ec   : > { %5253 = vmatprep.subr.bf16.mxu1 %v5252_v47  ;;  %v4147_v47 = vld [vmem:[%s7018_s1 + $0x868] sm:$0xff] }
 0x5ed   : > { %v5290_v50 = vpack.c.bf16 %v4147_v47, %v4146_v46  ;;  %v4174_v46 = vld [vmem:[%s7021_s4 + $0x58] sm:$0xff] }
 0x5ef   : > { %5255 = vmatpush3.bf16.msra.mxu1 %v5254_v52  ;;  %v4148_v52 = vld [vmem:[%s7018_s1 + $0x870] sm:$0xff] }
 0x5f0   : > { %5257 = vmatprep.subr.bf16.mxu1 %v5256_v53  ;;  %v4149_v53 = vld [vmem:[%s7018_s1 + $0x878] sm:$0xff] }
 0x5f1   : > { %v5294_v54 = vpack.c.bf16 %v4149_v53, %v4148_v52  ;;  %v4178_v52 = vld [vmem:[%s7021_s4 + $0x78] sm:$0xff] }
 0x5f3   : > { %5259 = vmatpush3.bf16.msra.mxu1 %v5258_v58  ;;  %v3553_v58 = vld [vmem:[%s7023_s6 + $0x8] sm:$0xff] }
 0x5f4   : > { %5261 = vmatprep.subr.bf16.mxu1 %v5260_v59  ;;  %3561 = vperm.xlu1 %5437, %v3553_v58   ;;  %v3552_v59 = vld [vmem:[%s7023_s6] sm:$0xff]  ;;  %v4188_v58 = vld [vmem:[%s7021_s4 + $0x90] sm:$0xff] }
 0x5f5   : > { %3556 = vperm.xlu0 %5436, %v3552_v59   ;;  %v4189_v59 = vld [vmem:[%s7021_s4 + $0x98] sm:$0xff] }
 0x5f7   : > { %5263 = vmatpush3.bf16.msra.mxu1 %v5262_v62  ;;  %v3584_v62 = vld [vmem:[%s7025_s8 + $0x8] sm:$0xff] }
 0x5f8   : > { %4774 = vmatprep.subr.mxu1 %v5472_v34  ;;  %3588 = vperm.xlu1 %5437, %v3583_v60   ;;  %v5324_v60 = vpack.c.bf16 %v4189_v59, %v4188_v58 }
 0x5f9   : > { %3593 = vperm.xlu0 %5436, %v3584_v62   ;;  %v4190_v62 = vld [vmem:[%s7021_s4 + $0xa0] sm:$0xff] }
 0x5fa   : > { %1788 = vmatmul.mubr.f32.vlgmr.msra.gmra.mrb[14].mxu1 %v5733_v16  ;;  %v4134_v16 = vld [vmem:[%s7018_s1 + $0x800] sm:$0xff] }
 0x5fb   : > { %4776 = vmatprep.mubr.msk.f32.mxu1 %vm5473_vm0, %v5472_v34  ;;  %v5266_v13 = vpack.c.bf16 %v4135_v4, %v4134_v16  ;;  %v3724_v4 = vsel %vm3721_vm5, 1, %v5474_v57 }
 0x5fd   : > { %3726 = vperm.xlu0 %5436, %v3722_v3   ;;  %v4192_v3 = vld [vmem:[%s7021_s4 + $0xb0] sm:$0xff] }
 0x601   : > { %3732 = vperm.xlu0 %5436, %v3724_v4  }
 0x673   : > { %v3562_v61 = vpop.permute.xlu1 %3561 }
 0x6ad   : > { %v1685_v63 = vpop.f32.mrb[12].mxu1 }
 0x6ae   : > { %v6435_v0 = vadd.f32 %v1685_v63, %v6326_v6  ;;  %v4768_v1 = vpop.f32.mrb[13].mxu1  ;;  %v4152_v6 = vld [vmem:[%s7018_s1 + $0x890] sm:$0xff]  ;;  %v3714_v63 = vld [vmem:[%s7026_s9 + $0x8] sm:$0xff] }
 0x6af   : > { %v5268_v12 = vpack.c.bf16 %v4153_v7, %v4152_v6  ;;  %v3585_v1 = vld [vmem:[%s7025_s8 + $0x10] sm:$0x1f]  ;;  %vm3720_vm4 = vcmp.lt.f32.partialorder %v3714_v63, 1.5  ;;  %vm3717_vm7 = vcmp.lt.f32.partialorder %v3714_v63, 0.5  ;;  %v3746_v7 = vsel %vm3718_vm8, 1, %v5474_v57 }
 0x6b0   : > { %3598 = vperm.xlu1 %5437, %v3585_v1   ;;  %v3723_v16 = vsel %vm3720_vm4, 1, %v5474_v57  ;;  %v3745_v6 = vsel %vm3717_vm7, 1, %v5474_v57  ;;  %vm3797_vm9 = vcmp.lt.f32.partialorder %v3714_v63, 3.5  ;;  %v4191_v63 = vld [vmem:[%s7021_s4 + $0xa8] sm:$0xff]  ;;  %vm3822_vm8 = vcmask 126976  }
 0x6b1   : > { %3751 = vperm.xlu0 %5436, %v3745_v6   ;;  %v5327_v1 = vpack.c.bf16 %v4191_v63, %v4190_v62  ;;  %v4213_v6 = vld [vmem:[%s7021_s4 + $0x108] sm:$0xff]  ;;  %v4202_v62 = vld [vmem:[%s7021_s4 + $0xd8] sm:$0xff] }
 0x6b4   : > { %3729 = vperm.xlu1 %5437, %v3723_v16   ;;  %v4193_v16 = vld [vmem:[%s7021_s4 + $0xb8] sm:$0xff] }
 0x6b5   : > { %v5330_v4 = vpack.c.bf16 %v4193_v16, %v4192_v3  ;;  %v4204_v3 = vld [vmem:[%s7021_s4 + $0xe8] sm:$0xff] }
 0x6cd   : > { %v4579_v5 = vpop.f32.mrb[14].mxu1 }
 0x6ce   : > { %v4580_v8 = vpop.f32.mrb[15].mxu1 }
 0x6cf   : > { %v4581_v10 = vadd.f32 %v4580_v8, %v4579_v5  ;;  %v3744_v5 = vsel %vm3716_vm6, 1, %v5474_v57  ;;  %v3775_v8 = vld [vmem:[%s7027_s10] sm:$0xff] }
 0x6d0   : > { %3748 = vperm.xlu1 %5437, %v3744_v5   ;;  %3780 = vperm.xlu0 %5436, %v3775_v8   ;;  %v4212_v5 = vld [vmem:[%s7021_s4 + $0x100] sm:$0xff]  ;;  %v4214_v8 = vld [vmem:[%s7021_s4 + $0x110] sm:$0xff] }
 0x6d1   : > { %4770 = vmatpush3.msk.msra.mxu0 %vm630_vm1, %v4581_v10  ;;  %v3800_v10 = vsel %vm3797_vm9, 1, %v5474_v57 }
 0x6d2   : > { %4772 = vmatmul.mubr.msk.f32.vlgmr.msra.gmra.mrb[14].mxu0 %vm626_vm2, %v4131_v11  ;;  %5265 = vmatprep.subr.bf16.mxu0 %v5264_v9  ;;  %v3777_v9 = vld [vmem:[%s7027_s10 + $0x10] sm:$0x1f] }
 0x6d3   : > { %5267 = vmatpush3.bf16.msra.mxu0 %v5266_v13  ;;  %1969 = vmatprep.mubr.f32.mxu0 %v5746_v21  ;;  %v5274_v21 = vpack.c.bf16 %v4139_v23, %v4138_v22  ;;  %v5475_v22 = vmov 0.0|0.0   ;;  %v2070_v23 = vld [vmem:[%s7021_s4 + $0x10] sm:$0xff] }
 0x6d4   : > { %5269 = vmatprep.subr.bf16.mxu0 %v5268_v12  ;;  %3754 = vperm.xlu1 %5437, %v3746_v7   ;;  %v5300_v25 = vpack.c.bf16 %v2071_v24, %v2070_v23  ;;  %v5345_v7 = vpack.c.bf16 %v4213_v6, %v4212_v5  ;;  %v4241_v23 = vld [vmem:[%s7021_s4 + $0x198] sm:$0xff] }
 0x6d5   : > { %3790 = vperm.xlu0 %5436, %v3777_v9   ;;  %v4215_v9 = vld [vmem:[%s7021_s4 + $0x118] sm:$0xff] }
 0x6d6   : > { %v4206_v5 = vld [vmem:[%s7021_s4 + $0xf8] sm:$0xff] }
 0x6d7   : > { %5271 = vmatpush3.bf16.msra.mxu0 %v5270_v20  ;;  %v2068_v20 = vld [vmem:[%s7021_s4] sm:$0xff] }
 0x6d8   : > { %5273 = vmatprep.subr.bf16.mxu0 %v5272_v19 }
 0x6d9   : > { %3806 = vperm.xlu0 %5436, %v3800_v10   ;;  %v5348_v10 = vpack.c.bf16 %v4215_v9, %v4214_v8 }
 0x6db   : > { %5275 = vmatpush3.bf16.msra.mxu0 %v5274_v21  ;;  %v2072_v21 = vld [vmem:[%s7021_s4 + $0x20] sm:$0xff] }
 0x6dc   : > { %5277 = vmatprep.subr.bf16.mxu0 %v5276_v27  ;;  %v2073_v27 = vld [vmem:[%s7021_s4 + $0x28] sm:$0xff] }
 0x6dd   : > { %v5303_v26 = vpack.c.bf16 %v2073_v27, %v2072_v21  ;;  %v4243_v21 = vld [vmem:[%s7021_s4 + $0x1a8] sm:$0xff] }
 0x6df   : > { %5279 = vmatpush3.bf16.msra.mxu0 %v5278_v31 }
 0x6e0   : > { %5281 = vmatprep.subr.bf16.mxu0 %v5280_v33 }
 0x6e3   : > { %5283 = vmatpush3.bf16.msra.mxu0 %v5282_v38 }
 0x6e4   : > { %5285 = vmatprep.subr.bf16.mxu0 %v5284_v39 }
 0x6e7   : > { %5287 = vmatpush3.bf16.msra.mxu0 %v5286_v44 }
 0x6e8   : > { %5289 = vmatprep.subr.bf16.mxu0 %v5288_v45  ;;  %v4173_v45 = vld [vmem:[%s7021_s4 + $0x50] sm:$0xff] }
 0x6e9   : > { %v5312_v47 = vpack.c.bf16 %v4174_v46, %v4173_v45 }
 0x6eb   : > { %5291 = vmatpush3.bf16.msra.mxu0 %v5290_v50  ;;  %v5315_v50 = vpack.c.bf16 %v4176_v49, %v4175_v48  ;;  %v4181_v48 = vld [vmem:[%s7022_s5 + $0x18] sm:$0xff] }
 0x6ec   : > { %5293 = vmatprep.subr.bf16.mxu0 %v5292_v51  ;;  %v4177_v51 = vld [vmem:[%s7021_s4 + $0x70] sm:$0xff] }
 0x6ed   : > { %v5318_v53 = vpack.c.bf16 %v4178_v52, %v4177_v51  ;;  %v2151_v51 = vld [vmem:[%s7022_s5 + $0x8] sm:$0xff]  ;;  %v4195_v52 = vld [vmem:[%s7022_s5 + $0x20] sm:$0xff] }
 0x6ef   : > { %5295 = vmatpush3.bf16.msra.mxu0 %v5294_v54  ;;  %v4186_v54 = vld [vmem:[%s7021_s4 + $0x80] sm:$0xff] }
 0x6f2   : > { %1970 = vmatmul.mubr.f32.vlgmr.msra.gmra.mrb[16].mxu0 %v5463_v55  ;;  %v4187_v55 = vld [vmem:[%s7021_s4 + $0x88] sm:$0xff] }
 0x6f3   : > { %v5321_v56 = vpack.c.bf16 %v4187_v55, %v4186_v54  ;;  %v4200_v54 = vld [vmem:[%s7021_s4 + $0xc8] sm:$0xff] }
 0x7a5   : > { %v1867_v11 = vpop.f32.mrb[14].mxu0 }
 0x7a6   : > { %v1871_v13 = vadd.f32 %v1867_v11, %v6435_v0  ;;  %v4773_v12 = vpop.f32.mrb[15].mxu0  ;;  %v2069_v0 = vld [vmem:[%s7021_s4 + $0x8] sm:$0xff]  ;;  %v4216_v11 = vld [vmem:[%s7021_s4 + $0x120] sm:$0xff] }
 0x7a7   : > { %v5297_v19 = vpack.c.bf16 %v2069_v0, %v2068_v20  ;;  %v4239_v20 = vld [vmem:[%s7021_s4 + $0x188] sm:$0xff] }
 0x7c5   : > { %v4616_v14 = vpop.f32.mrb[16].mxu0 }
 0x7c6   : > { %v4617_v15 = vpop.f32.mrb[17].mxu0 }
 0x7c7   : > { %v4618_v17 = vadd.f32 %v4617_v15, %v4616_v14  ;;  %v4218_v14 = vld [vmem:[%s7021_s4 + $0x130] sm:$0xff]  ;;  %v4219_v15 = vld [vmem:[%s7021_s4 + $0x138] sm:$0xff] }
 0x7c9   : > { %4775 = vmatpush3.msk.msra.mxu1 %vm630_vm1, %v4618_v17  ;;  %v5354_v17 = vpack.c.bf16 %v4219_v15, %v4218_v14  ;;  %v4209_v15 = vld [vmem:[%s7022_s5 + $0x38] sm:$0xff] }
 0x7ca   : > { %4777 = vmatmul.mubr.msk.f32.vlgmr.msra.gmra.mrb[16].mxu1 %vm626_vm2, %v4166_v18  ;;  %5296 = vmatprep.subr.bf16.mxu1 %v5475_v22  ;;  %v4238_v18 = vld [vmem:[%s7021_s4 + $0x180] sm:$0xff] }
 0x7cb   : > { %4795 = vmatprep.mubr.msk.f32.mxu1 %vm5473_vm0, %v5472_v34  ;;  %5298 = vmatpush3.bf16.msra.mxu1 %v5297_v19  ;;  %v5369_v0 = vpack.c.bf16 %v4239_v20, %v4238_v18  ;;  %v4240_v19 = vld [vmem:[%s7021_s4 + $0x190] sm:$0xff]  ;;  %v4221_v18 = vld [vmem:[%s7022_s5 + $0x40] sm:$0xff] }
 0x7cc   : > { %5299 = vmatprep.subr.bf16.mxu1 %v5475_v22  ;;  %v5372_v24 = vpack.c.bf16 %v4241_v23, %v4240_v19  ;;  %v4225_v20 = vld [vmem:[%s7021_s4 + $0x140] sm:$0xff]  ;;  %v4222_v19 = vld [vmem:[%s7022_s5 + $0x48] sm:$0xff] }
 0x7cf   : > { %5301 = vmatpush3.bf16.msra.mxu1 %v5300_v25  ;;  %v4242_v25 = vld [vmem:[%s7021_s4 + $0x1a0] sm:$0xff] }
 0x7d0   : > { %5302 = vmatprep.subr.bf16.mxu1 %v5475_v22  ;;  %v5375_v27 = vpack.c.bf16 %v4243_v21, %v4242_v25  ;;  %v4228_v25 = vld [vmem:[%s7021_s4 + $0x158] sm:$0xff] }
 0x7d3   : > { %5304 = vmatpush3.bf16.msra.mxu1 %v5303_v26  ;;  %v4244_v26 = vld [vmem:[%s7021_s4 + $0x1b0] sm:$0xff] }
 0x7d4   : > { %5305 = vmatprep.subr.bf16.mxu1 %v5475_v22  ;;  %v5378_v29 = vpack.c.bf16 %v4245_v28, %v4244_v26  ;;  %v4230_v26 = vld [vmem:[%s7021_s4 + $0x168] sm:$0xff] }
 0x7d7   : > { %5307 = vmatpush3.bf16.msra.mxu1 %v5306_v30  ;;  %v4251_v30 = vld [vmem:[%s7021_s4 + $0x1c0] sm:$0xff] }
 0x7d8   : > { %5308 = vmatprep.subr.bf16.mxu1 %v5475_v22 }
 0x89d   : > { %v2049_v31 = vpop.f32.mrb[16].mxu1 }
 0x89e   : > { %v2053_v33 = vadd.f32 %v2049_v31, %v1871_v13  ;;  %v4778_v32 = vpop.f32.mrb[17].mxu1  ;;  %v4217_v13 = vld [vmem:[%s7021_s4 + $0x128] sm:$0xff] }
 0x89f   : > { %v5351_v12 = vpack.c.bf16 %v4217_v13, %v4216_v11  ;;  %v4252_v31 = vld [vmem:[%s7021_s4 + $0x1c8] sm:$0xff]  ;;  %v4253_v32 = vld [vmem:[%s7021_s4 + $0x1d0] sm:$0xff] }
 0x8a0   : > { %v2060_v36 = vadd.f32 %v2058_v35, %v2053_v33  ;;  %v5381_v33 = vpack.c.bf16 %v4252_v31, %v4251_v30  ;;  %v4254_v35 = vld [vmem:[%s7021_s4 + $0x1d8] sm:$0xff] }
 0x8a1   : > { %v4232_v30 = vld [vmem:[%s7021_s4 + $0x178] sm:$0xff] }
 0x8a2   : > { %v4169_v37 = vmul.f32 -1.442695, %v2060_v36 }
 0x8a4   : > { %5439 = vpow2.f32 %v4169_v37  ;;  %v4255_v37 = vld [vmem:[%s7021_s4 + $0x1e0] sm:$0xff] }
 0x8ae   : > { %v5440_v38 = vpop.eup %5439 }
 0x8af   : > { %v2064_v39 = vadd.f32 1.0, %v5440_v38  ;;  %v4256_v38 = vld [vmem:[%s7021_s4 + $0x1e8] sm:$0xff] }
 0x8b1   : > { %5441 = vrcp.f32 %v2064_v39  ;;  %v5387_v39 = vpack.c.bf16 %v4256_v38, %v4255_v37  ;;  %v4247_v37 = vld [vmem:[%s7022_s5 + $0x60] sm:$0xff]  ;;  %v4248_v38 = vld [vmem:[%s7022_s5 + $0x68] sm:$0xff] }
 0x8bb   : > { %v5442_v42 = vpop.eup %5441 }
 0x8bc   : > { %v6633_v44 = vmul.f32 %v5442_v42, %v2060_v36  ;;  %v5384_v36 = vpack.c.bf16 %v4254_v35, %v4253_v32  ;;  %v5390_v42 = vpack.c.bf16 %v4258_v41, %v4257_v40  ;;  %v4235_v35 = vld [vmem:[%s7022_s5 + $0x58] sm:$0xff]  ;;  %v4264_v40 = vld [vmem:[%s7021_s4 + $0x200] sm:$0xff]  ;;  %v4265_v41 = vld [vmem:[%s7021_s4 + $0x208] sm:$0xff] }
 0x8be   : > { %4796 = vmatmul.mubr.msk.f32.vlgmr.msra.gmra.mrb[18].mxu1 %vm2076_vm10, %v6633_v44 }
 0x8bf   : > { %5310 = vmatpush3.bf16.msra.mxu1 %v5309_v43  ;;  %4814 = vmatprep.mubr.msk.f32.mxu1 %vm5473_vm0, %v5472_v34  ;;  %v4180_v43 = vld [vmem:[%s7022_s5 + $0x10] sm:$0xff] }
 0x8c0   : > { %5311 = vmatprep.subr.bf16.mxu1 %v5475_v22  ;;  %4819 = vmatprep.mubr.msk.f32.mxu0 %vm2234_vm11, %v4180_v43  ;;  %v5393_v43 = vpack.c.bf16 %v4265_v41, %v4264_v40 }
 0x8c3   : > { %5313 = vmatpush3.bf16.msra.mxu1 %v5312_v47 }
 0x8c4   : > { %5314 = vmatprep.subr.bf16.mxu1 %v5475_v22 }
 0x8c7   : > { %5316 = vmatpush3.bf16.msra.mxu1 %v5315_v50  ;;  %v2150_v50 = vld [vmem:[%s7022_s5] sm:$0xff] }
 0x8c8   : > { %5317 = vmatprep.subr.bf16.mxu1 %v5475_v22 }
 0x8cb   : > { %5319 = vmatpush3.bf16.msra.mxu1 %v5318_v53  ;;  %v4199_v53 = vld [vmem:[%s7021_s4 + $0xc0] sm:$0xff] }
 0x8cc   : > { %5320 = vmatprep.subr.bf16.mxu1 %v5475_v22  ;;  %v5333_v58 = vpack.c.bf16 %v4200_v54, %v4199_v53  ;;  %v4273_v54 = vld [vmem:[%s7022_s5 + $0x80] sm:$0xff] }
 0x8ce   : > { %4815 = vmatmul.mubr.msk.f32.vlgmr.msra.gmra.mrb[20].mxu1 %vm2076_vm10, %v6633_v44 }
 0x8cf   : > { %5322 = vmatpush3.bf16.msra.mxu1 %v5321_v56  ;;  %4843 = vmatprep.mubr.msk.f32.mxu1 %vm5473_vm0, %v5472_v34  ;;  %v4196_v56 = vld [vmem:[%s7022_s5 + $0x28] sm:$0xff] }
 0x8d0   : > { %5323 = vmatprep.subr.bf16.mxu1 %v5475_v22 }
 0x8d3   : > { %5325 = vmatpush3.bf16.msra.mxu1 %v5324_v60  ;;  %v4201_v60 = vld [vmem:[%s7021_s4 + $0xd0] sm:$0xff] }
 0x8d4   : > { %5326 = vmatprep.subr.bf16.mxu1 %v5475_v22  ;;  %v5336_v63 = vpack.c.bf16 %v4202_v62, %v4201_v60  ;;  %v3557_v62 = vpop.permute.xlu0 %3556 }
 0x8d7   : > { %5328 = vmatpush3.bf16.msra.mxu1 %v5327_v1  ;;  %v4203_v1 = vld [vmem:[%s7021_s4 + $0xe0] sm:$0xff] }
 0x8d8   : > { %5329 = vmatprep.subr.bf16.mxu1 %v5475_v22  ;;  %v5339_v16 = vpack.c.bf16 %v4204_v3, %v4203_v1 }
 0x8db   : > { %5331 = vmatpush3.bf16.msra.mxu1 %v5330_v4  ;;  %v4205_v4 = vld [vmem:[%s7021_s4 + $0xf0] sm:$0xff] }
 0x8dc   : > { %5344 = vmatprep.subr.bf16.mxu1 %v5475_v22  ;;  %v5342_v6 = vpack.c.bf16 %v4206_v5, %v4205_v4 }
 0x8de   : > { %4844 = vmatmul.mubr.msk.f32.vlgmr.msra.gmra.mrb[22].mxu1 %vm2076_vm10, %v6633_v44 }
 0x8df   : > { %5346 = vmatpush3.bf16.msra.mxu1 %v5345_v7  ;;  %4891 = vmatprep.mubr.msk.f32.mxu1 %vm5473_vm0, %v5472_v34 }
 0x8e0   : > { %5347 = vmatprep.subr.bf16.mxu1 %v5475_v22 }
 0x8e3   : > { %5349 = vmatpush3.bf16.msra.mxu1 %v5348_v10 }
 0x8e4   : > { %5350 = vmatprep.subr.bf16.mxu1 %v5475_v22 }
 0x8e7   : > { %5352 = vmatpush3.bf16.msra.mxu1 %v5351_v12  ;;  %v4208_v12 = vld [vmem:[%s7022_s5 + $0x30] sm:$0xff] }
 0x8e8   : > { %5353 = vmatprep.subr.bf16.mxu1 %v5475_v22 }
 0x8eb   : > { %5355 = vmatpush3.bf16.msra.mxu1 %v5354_v17 }
 0x8ec   : > { %5368 = vmatprep.subr.bf16.mxu1 %v5475_v22 }
 0x8ee   : > { %4892 = vmatmul.mubr.msk.f32.vlgmr.msra.gmra.mrb[24].mxu1 %vm2076_vm10, %v6633_v44 }
 0x8ef   : > { %5370 = vmatpush3.bf16.msra.mxu1 %v5369_v0  ;;  %4939 = vmatprep.mubr.msk.f32.mxu1 %vm5473_vm0, %v5472_v34  ;;  %v4226_v0 = vld [vmem:[%s7021_s4 + $0x148] sm:$0xff] }
 0x8f0   : > { %5371 = vmatprep.subr.bf16.mxu1 %v5475_v22  ;;  %v5357_v23 = vpack.c.bf16 %v4226_v0, %v4225_v20 }
 0x8f3   : > { %5373 = vmatpush3.bf16.msra.mxu1 %v5372_v24  ;;  %v4227_v24 = vld [vmem:[%s7021_s4 + $0x150] sm:$0xff] }
 0x8f4   : > { %5374 = vmatprep.subr.bf16.mxu1 %v5475_v22  ;;  %v5360_v21 = vpack.c.bf16 %v4228_v25, %v4227_v24 }
 0x8f7   : > { %5376 = vmatpush3.bf16.msra.mxu1 %v5375_v27  ;;  %v4229_v27 = vld [vmem:[%s7021_s4 + $0x160] sm:$0xff] }
 0x8f8   : > { %5377 = vmatprep.subr.bf16.mxu1 %v5475_v22  ;;  %v5363_v28 = vpack.c.bf16 %v4230_v26, %v4229_v27 }
 0x8fb   : > { %5379 = vmatpush3.bf16.msra.mxu1 %v5378_v29  ;;  %v4231_v29 = vld [vmem:[%s7021_s4 + $0x170] sm:$0xff] }
 0x8fc   : > { %5380 = vmatprep.subr.bf16.mxu1 %v5475_v22  ;;  %v5366_v31 = vpack.c.bf16 %v4232_v30, %v4231_v29  ;;  %v3737_v30 = vlaneseq }
 0x8fe   : > { %4940 = vmatmul.mubr.msk.f32.vlgmr.msra.gmra.mrb[26].mxu1 %vm2076_vm10, %v6633_v44 }
 0x8ff   : > { %5382 = vmatpush3.bf16.msra.mxu1 %v5381_v33  ;;  %4963 = vmatprep.mubr.msk.f32.mxu1 %vm5473_vm0, %v5472_v34  ;;  %v4234_v33 = vld [vmem:[%s7022_s5 + $0x50] sm:$0xff] }
 0x900   : > { %5383 = vmatprep.subr.bf16.mxu1 %v5475_v22 }
 0x903   : > { %5385 = vmatpush3.bf16.msra.mxu1 %v5384_v36 }
 0x904   : > { %5386 = vmatprep.subr.bf16.mxu1 %v5475_v22 }
 0x907   : > { %5388 = vmatpush3.bf16.msra.mxu1 %v5387_v39  ;;  %v4260_v39 = vld [vmem:[%s7022_s5 + $0x70] sm:$0xff] }
 0x908   : > { %5389 = vmatprep.subr.bf16.mxu1 %v5475_v22 }
 0x90b   : > { %5391 = vmatpush3.bf16.msra.mxu1 %v5390_v42  ;;  %v4261_v42 = vld [vmem:[%s7022_s5 + $0x78] sm:$0xff] }
 0x90c   : > { %5404 = vmatprep.subr.bf16.mxu1 %v5475_v22 }
 0x90e   : > { %4964 = vmatmul.mubr.msk.f32.vlgmr.msra.gmra.mrb[28].mxu1 %vm2076_vm10, %v6633_v44 }
 0x90f   : > { %4999 = vmatprep.mubr.msk.f32.mxu1 %vm5473_vm0, %v5472_v34 }
 0x991   : > { %v2146_v45 = vpop.f32.mrb[18].mxu1 }
 0x992   : > { %v4797_v46 = vpop.f32.mrb[19].mxu1 }
 0x993   : > { %v4267_v46 = vld [vmem:[%s7021_s4 + $0x218] sm:$0xff] }
 0x9a1   : > { %v2227_v47 = vpop.f32.mrb[20].mxu1 }
 0x9a2   : > { %v4816_v49 = vpop.f32.mrb[21].mxu1  ;;  %4817 = vmatprep.subr.mxu0 %v2227_v47 }
 0x9a3   : > { %4818 = vmatpush3.msra.mxu0 %v2227_v47  ;;  %v4269_v49 = vld [vmem:[%s7021_s4 + $0x228] sm:$0xff] }
 0x9a4   : > { %4822 = vmatprep.subr.mxu0 %v2146_v45  ;;  %4820 = vmatmul.mubr.msk.f32.vlgmr.msra.gmra.mrb[18].mxu0 %vm2234_vm11, %v4181_v48  ;;  %v4268_v48 = vld [vmem:[%s7021_s4 + $0x220] sm:$0xff] }
 0x9a5   : > { %4823 = vmatpush3.msra.mxu0 %v2146_v45  ;;  %4824 = vmatprep.mubr.msk.f32.mxu0 %vm2234_vm11, %v2150_v50  ;;  %v4266_v45 = vld [vmem:[%s7021_s4 + $0x210] sm:$0xff]  ;;  %v5399_v50 = vpack.c.bf16 %v4269_v49, %v4268_v48 }
 0x9a6   : > { %v5396_v47 = vpack.c.bf16 %v4267_v46, %v4266_v45 }
 0x9ac   : > { %4825 = vmatmul.mubr.msk.f32.vlgmr.msra.gmra.mrb[18].mxu0 %vm2234_vm11, %v2151_v51  ;;  %v4270_v51 = vld [vmem:[%s7021_s4 + $0x230] sm:$0xff] }
 0x9ad   : > { %4848 = vmatprep.mubr.msk.f32.mxu0 %vm2234_vm11, %v4195_v52  ;;  %v4271_v52 = vld [vmem:[%s7021_s4 + $0x238] sm:$0xff] }
 0x9ae   : > { %v5402_v53 = vpack.c.bf16 %v4271_v52, %v4270_v51 }
 0x9b1   : > { %v2472_v55 = vpop.f32.mrb[22].mxu1 }
 0x9b2   : > { %v4845_v59 = vpop.f32.mrb[23].mxu1  ;;  %4846 = vmatprep.subr.mxu0 %v2472_v55 }
 0x9b3   : > { %4847 = vmatpush3.msra.mxu0 %v2472_v55  ;;  %v3776_v55 = vld [vmem:[%s7027_s10 + $0x8] sm:$0xff] }
 0x9b4   : > { %5332 = vmatprep.subr.bf16.mxu0 %v5475_v22  ;;  %4849 = vmatmul.mubr.msk.f32.vlgmr.msra.gmra.mrb[18].mxu0 %vm2234_vm11, %v4196_v56  ;;  %v3799_v56 = vsel %vm3796_vm12, 1, %v5474_v57 }
 0x9b5   : > { %5334 = vmatpush3.bf16.msra.mxu0 %v5333_v58  ;;  %4867 = vmatprep.mubr.msk.f32.mxu0 %vm5473_vm0, %v5472_v34  ;;  %v4274_v58 = vld [vmem:[%s7022_s5 + $0x88] sm:$0xff] }
 0x9b6   : > { %5335 = vmatprep.subr.bf16.mxu0 %v5475_v22  ;;  %3785 = vperm.xlu1 %5437, %v3776_v55  }
 0x9b9   : > { %5337 = vmatpush3.bf16.msra.mxu0 %v5336_v63 }
 0x9ba   : > { %5338 = vmatprep.subr.bf16.mxu0 %v5475_v22  ;;  %3803 = vperm.xlu1 %5437, %v3799_v56  }
 0x9bd   : > { %5340 = vmatpush3.bf16.msra.mxu0 %v5339_v16 }
 0x9be   : > { %5341 = vmatprep.subr.bf16.mxu0 %v5475_v22 }
 0x9c1   : > { %5343 = vmatpush3.bf16.msra.mxu0 %v5342_v6  ;;  %v2802_v7 = vpop.f32.mrb[24].mxu1 }
 0x9c2   : > { %v4893_v8 = vpop.f32.mrb[25].mxu1 }
 0x9c4   : > { %4868 = vmatmul.mubr.msk.f32.vlgmr.msra.gmra.mrb[20].mxu0 %vm2076_vm10, %v6633_v44 }
 0x9c5   : > { %4872 = vmatprep.mubr.msk.f32.mxu0 %vm2234_vm11, %v4208_v12  ;;  %v3581_v12 = vld [vmem:[%s7024_s7 + $0x8] sm:$0xff] }
 0x9d1   : > { %v3132_v9 = vpop.f32.mrb[26].mxu1 }
 0x9d2   : > { %v4941_v10 = vpop.f32.mrb[27].mxu1 }
 0x9e1   : > { %v3297_v11 = vpop.f32.mrb[28].mxu1 }
 0x9e2   : > { %v4965_v13 = vpop.f32.mrb[29].mxu1 }
 0x9e3   : > { %v3580_v13 = vld [vmem:[%s7024_s7] sm:$0xff] }
 0xa97   : > { %v2637_v14 = vpop.f32.mrb[20].mxu0 }
 0xa98   : > { %v4869_v17 = vpop.f32.mrb[21].mxu0  ;;  %4870 = vmatprep.subr.mxu0 %v2637_v14 }
 0xa99   : > { %4871 = vmatpush3.msra.mxu0 %v2637_v14  ;;  %v3582_v14 = vld [vmem:[%s7024_s7 + $0x10] sm:$0x1f]  ;;  %v3594_v17 = vpop.permute.xlu0 %3593 }
 0xa9a   : > { %4873 = vmatmul.mubr.msk.f32.vlgmr.msra.gmra.mrb[18].mxu0 %vm2234_vm11, %v4209_v15  ;;  %4894 = vmatprep.subr.mxu0 %v2802_v7  ;;  %v3589_v15 = vpop.permute.xlu1 %3588 }
 0xa9b   : > { %4895 = vmatpush3.msra.mxu0 %v2802_v7  ;;  %4896 = vmatprep.mubr.msk.f32.mxu0 %vm2234_vm11, %v4221_v18 }
 0xa9c   : > { %5356 = vmatprep.subr.bf16.mxu0 %v5475_v22 }
 0xa9d   : > { %v6984_v25 = vpop.permute.xlu0 %3726 }
 0xa9e   : > { %vm3734_vm15 = vcmp.eq.s32.totalorder %v6984_v25, 1 }
 0xaa2   : > { %4897 = vmatmul.mubr.msk.f32.vlgmr.msra.gmra.mrb[18].mxu0 %vm2234_vm11, %v4222_v19 }
 0xaa3   : > { %5358 = vmatpush3.bf16.msra.mxu0 %v5357_v23  ;;  %4915 = vmatprep.mubr.msk.f32.mxu0 %vm5473_vm0, %v5472_v34  ;;  %v3599_v23 = vpop.permute.xlu1 %3598 }
 0xaa4   : > { %5359 = vmatprep.subr.bf16.mxu0 %v5475_v22 }
 0xaa7   : > { %5361 = vmatpush3.bf16.msra.mxu0 %v5360_v21 }
 0xaa8   : > { %5362 = vmatprep.subr.bf16.mxu0 %v5475_v22 }
 0xaab   : > { %5364 = vmatpush3.bf16.msra.mxu0 %v5363_v28 }
 0xaac   : > { %5365 = vmatprep.subr.bf16.mxu0 %v5475_v22 }
 0xaaf   : > { %5367 = vmatpush3.bf16.msra.mxu0 %v5366_v31  ;;  %v6986_v31 = vpop.permute.xlu0 %3732 }
 0xab0   : > { %vm3736_vm2 = vcmp.eq.s32.totalorder %v6986_v31, 1 }
 0xab2   : > { %4916 = vmatmul.mubr.msk.f32.vlgmr.msra.gmra.mrb[22].mxu0 %vm2076_vm10, %v6633_v44 }
 0xab3   : > { %4920 = vmatprep.mubr.msk.f32.mxu0 %vm2234_vm11, %v4234_v33  ;;  %v6988_v33 = vpop.permute.xlu1 %3729 }
 0xb85   : > { %v2967_v32 = vpop.f32.mrb[22].mxu0 }
 0xb86   : > { %v4917_v36 = vpop.f32.mrb[23].mxu0  ;;  %4918 = vmatprep.subr.mxu0 %v2967_v32 }
 0xb87   : > { %4919 = vmatpush3.msra.mxu0 %v2967_v32  ;;  %v3738_v36 = vshrl.u32 %v3737_v30, 7 }
 0xb88   : > { %4921 = vmatmul.mubr.msk.f32.vlgmr.msra.gmra.mrb[18].mxu0 %vm2234_vm11, %v4235_v35  ;;  %4942 = vmatprep.subr.mxu0 %v3132_v9 }
 0xb89   : > { %4943 = vmatpush3.msra.mxu0 %v3132_v9  ;;  %4944 = vmatprep.mubr.msk.f32.mxu0 %vm2234_vm11, %v4247_v37  ;;  %v3739_v41 = vsub.s32 1, %v3738_v36  ;;  %v3761_v45 = vsub.s32 0, %v3738_v36 }
 0xb8a   : > { %4966 = vmatprep.subr.mxu0 %v3297_v11 }
 0xb90   : > { %4945 = vmatmul.mubr.msk.f32.vlgmr.msra.gmra.mrb[18].mxu0 %vm2234_vm11, %v4248_v38  ;;  %v3752_v38 = vpop.permute.xlu0 %3751 }
 0xb91   : > { %4967 = vmatpush3.msra.mxu0 %v3297_v11  ;;  %4968 = vmatprep.mubr.msk.f32.mxu0 %vm2234_vm11, %v4260_v39  ;;  %v3749_v39 = vpop.permute.xlu1 %3748  ;;  %vm3757_vm3 = vcmp.eq.s32.totalorder %v3752_v38, 1 }
 0xb92   : > { %5392 = vmatprep.subr.bf16.mxu0 %v5475_v22  ;;  %vm3756_vm1 = vcmp.eq.s32.totalorder %v3749_v39, 1 }
 0xb94   : > { %v3781_v48 = vpop.permute.xlu0 %3780 }
 0xb95   : > { %v3755_v49 = vpop.permute.xlu1 %3754 }
 0xb96   : > { %vm3758_vm5 = vcmp.eq.s32.totalorder %v3755_v49, 1 }
 0xb98   : > { %4969 = vmatmul.mubr.msk.f32.vlgmr.msra.gmra.mrb[18].mxu0 %vm2234_vm11, %v4261_v42  ;;  %v3712_v42 = vld [vmem:[%s7028_s11] sm:$0x3]  ;;  %v3791_v55 = vpop.permute.xlu0 %3790 }
 0xb99   : > { %5394 = vmatpush3.bf16.msra.mxu0 %v5393_v43  ;;  %4987 = vmatprep.mubr.msk.f32.mxu0 %vm5473_vm0, %v5472_v34  ;;  %v3762_v51 = vrot.slane %v3712_v42, %v3761_v45 }
 0xb9a   : > { %5395 = vmatprep.subr.bf16.mxu0 %v5475_v22 }
 0xb9d   : > { %5397 = vmatpush3.bf16.msra.mxu0 %v5396_v47  ;;  %v3740_v47 = vrot.slane %v3712_v42, %v3739_v41 }
 0xb9e   : > { %5398 = vmatprep.subr.bf16.mxu0 %v5475_v22 }
 0xb9f   : > { %v3741_v52 = vsel %vm3734_vm15, %v3740_v47, 0.0 }
 0xba1   : > { %5400 = vmatpush3.bf16.msra.mxu0 %v5399_v50 }
 0xba2   : > { %5401 = vmatprep.subr.bf16.mxu0 %v5475_v22  ;;  %v3801_v22 = vsel %vm3798_vm13, 1, %v5474_v57 }
 0xba3   : > { %3809 = vperm.xlu1 %5437, %v3801_v22  }
 0xba5   : > { %5403 = vmatpush3.bf16.msra.mxu0 %v5402_v53  ;;  %v3786_v53 = vpop.permute.xlu1 %3785 }
 0xba8   : > { %4988 = vmatmul.mubr.msk.f32.vlgmr.msra.gmra.mrb[24].mxu0 %vm2076_vm10, %v6633_v44 }
 0xba9   : > { %4992 = vmatprep.mubr.msk.f32.mxu0 %vm2234_vm11, %v4273_v54 }
 0xc7b   : > { %v3462_v44 = vpop.f32.mrb[24].mxu0 }
 0xc7c   : > { %v4989_v59 = vpop.f32.mrb[25].mxu0  ;;  %4990 = vmatprep.subr.mxu0 %v3462_v44 }
 0xc7d   : > { %4991 = vmatpush3.msra.mxu0 %v3462_v44  ;;  %v3763_v44 = vsel %vm3756_vm1, %v3762_v51, %v3741_v52 }
 0xc7e   : > { %4993 = vmatmul.mubr.msk.f32.vlgmr.msra.gmra.mrb[18].mxu0 %vm2234_vm11, %v4274_v58 }
 0xd51   : > { %v4994_v60 = vpop.f32.mrb[18].mxu0 }
 0xd52   : > { %v3565_v63 = vadd.f32 %v4994_v60, %v3562_v61  ;;  %v3541_v1 = vpop.f32.mrb[19].mxu0  ;;  %v3804_v60 = vpop.permute.xlu1 %3803 }
 0xd53   : > { %v3564_v2 = vadd.f32 %v3557_v62, %v3541_v1  ;;  %vm3811_vm4 = vcmp.eq.s32.totalorder %v3804_v60, 1 }
 0xd54   : > { %v4278_v3 = vmul.f32 -1.442695, %v3565_v63 }
 0xd55   : > { %v4277_v16 = vmul.f32 -1.442695, %v3564_v2 }
 0xd56   : > { %5443 = vpow2.f32 %v4278_v3 }
 0xd57   : > { %5445 = vpow2.f32 %v4277_v16  ;;  %v3807_v16 = vpop.permute.xlu0 %3806 }
 0xd58   : > { %vm3812_vm6 = vcmp.eq.s32.totalorder %v3807_v16, 1 }
 0xd60   : > { %v5444_v57 = vpop.eup %5443 }
 0xd61   : > { %v5446_v4 = vpop.eup %5445  ;;  %v3573_v5 = vadd.f32 1.0, %v5444_v57 }
 0xd62   : > { %v3572_v6 = vadd.f32 1.0, %v5446_v4 }
 0xd63   : > { %5447 = vrcp.f32 %v3573_v5 }
 0xd64   : > { %5449 = vrcp.f32 %v3572_v6 }
 0xd6d   : > { %v5448_v7 = vpop.eup %5447 }
 0xd6e   : > { %v5450_v8 = vpop.eup %5449  ;;  %v3579_v9 = vmul.f32 %v5448_v7, %v3565_v63 }
 0xd6f   : > { %v3578_v10 = vmul.f32 %v5450_v8, %v3564_v2  ;;  %v3743_v2 = vsel %vm3736_vm2, %v3740_v47, 0.0 }
 0xd71   : > { %v5405_v11 = vpack.c.bf16 %v3579_v9, %v3578_v10 }
 0xd73   : > { %5406 = vmatpush3.bf16.msra.mxu1 %v5405_v11  ;;  %v3765_v11 = vsel %vm3758_vm5, %v3762_v51, %v3743_v2 }
 0xd76   : > { %5000 = vmatmul.mubr.msk.f32.vlgmr.msra.gmra.mrb[30].mxu1 %vm3601_vm14, %v3580_v13  ;;  %v3810_v13 = vpop.permute.xlu1 %3809 }
 0xd77   : > { %5002 = vmatprep.mubr.msk.f32.mxu1 %vm5473_vm0, %v5472_v34  ;;  %vm3813_vm7 = vcmp.eq.s32.totalorder %v3810_v13, 1 }
 0xd7a   : > { %5003 = vmatmul.mubr.msk.f32.gmra.mrb[32].mxu1 %vm3601_vm14, %v3581_v12 }
 0xd7b   : > { %5005 = vmatprep.mubr.msk.f32.mxu1 %vm5473_vm0, %v5472_v34  ;;  %vm3735_vm0 = vcmp.eq.s32.totalorder %v6988_v33, 1 }
 0xd7c   : > { %v3742_v22 = vsel %vm3735_vm0, %v3740_v47, 0.0 }
 0xd7d   : > { %v3764_v3 = vsel %vm3757_vm3, %v3762_v51, %v3742_v22 }
 0xd7e   : > { %5006 = vmatmul.mubr.msk.f32.gmra.mrb[34].mxu1 %vm3601_vm14, %v3582_v14 }
 0xe49   : > { %v3677_v18 = vpop.f32.mrb[30].mxu1 }
 0xe4a   : > { %v3678_v20 = vadd.f32 %v3677_v18, %v3589_v15  ;;  %v5001_v0 = vpop.f32.mrb[31].mxu1 }
 0xe4c   : > { %v4282_v19 = vmul.f32 -1.442695, %v3678_v20 }
 0xe4d   : > { %v3682_v24 = vpop.f32.mrb[32].mxu1 }
 0xe4e   : > { %5451 = vpow2.f32 %v4282_v19  ;;  %v3683_v21 = vadd.f32 %v3682_v24, %v3594_v17  ;;  %v5004_v27 = vpop.f32.mrb[33].mxu1 }
 0xe50   : > { %v4283_v34 = vmul.f32 -1.442695, %v3683_v21 }
 0xe51   : > { %v3687_v26 = vpop.f32.mrb[34].mxu1 }
 0xe52   : > { %5453 = vpow2.f32 %v4283_v34  ;;  %v3688_v28 = vadd.f32 %v3687_v26, %v3599_v23  ;;  %v5007_v29 = vpop.f32.mrb[35].mxu1 }
 0xe54   : > { %v4284_v32 = vmul.f32 -1.442695, %v3688_v28 }
 0xe56   : > { %5455 = vpow2.f32 %v4284_v32 }
 0xe58   : > { %v5452_v35 = vpop.eup %5451 }
 0xe59   : > { %v3700_v37 = vadd.f32 1.0, %v5452_v35 }
 0xe5b   : > { %5457 = vrcp.f32 %v3700_v37 }
 0xe5c   : > { %v5454_v40 = vpop.eup %5453 }
 0xe5d   : > { %v3701_v43 = vadd.f32 1.0, %v5454_v40 }
 0xe5f   : > { %5459 = vrcp.f32 %v3701_v43 }
 0xe60   : > { %v5456_v46 = vpop.eup %5455 }
 0xe61   : > { %v3702_v50 = vadd.f32 1.0, %v5456_v46 }
 0xe63   : > { %5461 = vrcp.f32 %v3702_v50 }
 0xe65   : > { %v5458_v54 = vpop.eup %5457 }
 0xe66   : > { %v3709_v56 = vmul.f32 2.0, %v5458_v54 }
 0xe68   : > { %v3766_v58 = vadd.f32 %v3763_v44, %v3709_v56  ;;  %v3772_v59 = vmul.f32 %v3709_v56, %v3709_v56 }
 0xe69   : > { %v5460_v61 = vpop.eup %5459 }
 0xe6a   : > { %v3769_v62 = vmul.f32 4.0, %v3766_v58  ;;  %v3793_v63 = vmul.f32 %v3781_v48, %v3772_v59  ;;  %v3710_v1 = vmul.f32 2.0, %v5460_v61 }
 0xe6c   : > { %v3814_v57 = vsel %vm3811_vm4, %v3793_v63, %v5458_v54  ;;  %v3767_v4 = vadd.f32 %v3764_v3, %v3710_v1  ;;  %v3773_v5 = vmul.f32 %v3710_v1, %v3710_v1 }
 0xe6d   : > { %v5462_v6 = vpop.eup %5461  ;;  %v3817_v7 = vsel %vm3734_vm15, %v3769_v62, %v3814_v57 }
 0xe6e   : > { %3820 = vst.msk [vmem:[%s413_s23] sm:$0xff] %vm3601_vm14, %v3817_v7  ;;  %v3770_v8 = vmul.f32 4.0, %v3767_v4  ;;  %v3794_v9 = vmul.f32 %v3786_v53, %v3773_v5  ;;  %v3711_v10 = vmul.f32 2.0, %v5462_v6 }
 0xe70   : > { %v3815_v12 = vsel %vm3812_vm6, %v3794_v9, %v5460_v61  ;;  %v3768_v14 = vadd.f32 %v3765_v11, %v3711_v10  ;;  %v3774_v15 = vmul.f32 %v3711_v10, %v3711_v10 }
 0xe71   : > { %v3818_v17 = vsel %vm3735_vm0, %v3770_v8, %v3815_v12 }
 0xe72   : > { %3821 = vst.msk [vmem:[%s413_s23 + $0x8] sm:$0xff] %vm3601_vm14, %v3818_v17  ;;  %v3771_v18 = vmul.f32 4.0, %v3768_v14  ;;  %v3795_v20 = vmul.f32 %v3791_v55, %v3774_v15 }
 0xe74   : > { %v3816_v0 = vsel %vm3813_vm7, %v3795_v20, %v5462_v6 }
 0xe75   : > { %v3819_v19 = vsel %vm3736_vm2, %v3771_v18, %v3816_v0 }
 0xe76   : > { %3823 = vst.msk [vmem:[%s413_s23 + $0x10] sm:$0x1f] %vm3822_vm8, %v3819_v19 }
 0xe77 PF: > { %s22_s21 = sadd.s32 1, %s5470_s21  }
 0xe78   : > { %p19_p4 = scmp.ge.s32.totalorder %s22_s21, 4  }
 0xe7a   :  { %21 = sbr.rel (!%p19_p4) target bundleno = 1 (0x1), region = 130 }

</bundles_post_ra>
